<compile_context>
chip_gen: v7x
topology: tpu7x:2x2x1
jax: 0.10.0
libtpu: 0.0.40
codegen_flags: <defaults>
</compile_context>

<pallas_src>
import functools

import jax
import jax.numpy as jnp
from jax.experimental import pallas as pl
from jax.experimental.pallas import tpu as pltpu

ZP = 128   # lane-padded width for z / reward-input
RP = 128   # lane-padded width for reward output


# ----------------------------------------------------------------------------
# Fused forward kernel: everything stays in VMEM, bf16 MXU inputs, f32 accum.
# ----------------------------------------------------------------------------
def _fused_ae_kernel(
    o_ref, a_ref,
    ew1_ref, eb1_ref, ew2_ref, eb2_ref,
    dw1_ref, db1_ref, dw2_ref, db2_ref,
    rw1_ref, rb1_ref, rw2_ref, rb2_ref,
    z_out_ref, orec_out_ref, r_out_ref,
    *, batch, use_act,
):
    bf16 = jnp.bfloat16

    x = o_ref[...]                                        # (2*BP, o_dim) bf16

    # ---- encoder: o and o_next batched into one matmul pair ----
    h1 = jnp.dot(x, ew1_ref[...], preferred_element_type=jnp.float32)
    h1 = jnp.maximum(h1 + eb1_ref[...], 0.0)              # f32 (2*BP, h_dim)
    z_both = jnp.dot(h1.astype(bf16), ew2_ref[...],
                     preferred_element_type=jnp.float32) + eb2_ref[...]

    z = z_both[:batch]                                    # (BP, ZP), tile-aligned split
    z_next = z_both[batch:]                               # (BP, ZP)
    z_out_ref[...] = z                                    # lane-dense f32 slab

    # ---- reward head ----
    # padded z cols (>= z_dim) are exactly zero, so adding the zero-padded
    # action (placed at column z_dim) reproduces torch.cat([z, a], -1) w.r.t.
    # the row-padded rw_w1.
    zr = (z if use_act else z_next) + a_ref[...]          # f32 (BP, ZP)
    hr = jnp.dot(zr.astype(bf16), rw1_ref[...],
                 preferred_element_type=jnp.float32)
    hr = jnp.maximum(hr + rb1_ref[...], 0.0)
    r_out_ref[...] = jnp.dot(hr.astype(bf16), rw2_ref[...],
                             preferred_element_type=jnp.float32) + rb2_ref[...]

    # ---- decoder on z ----
    hd = jnp.dot(z.astype(bf16), dw1_ref[...],
                 preferred_element_type=jnp.float32)
    hd = jnp.maximum(hd + db1_ref[...], 0.0)
    orec_out_ref[...] = jnp.dot(hd.astype(bf16), dw2_ref[...],
                                preferred_element_type=jnp.float32) + db2_ref[...]


def _vmem_spec(shape):
    nd = len(shape)
    return pl.BlockSpec(shape, lambda i, _nd=nd: (0,) * _nd)


# ----------------------------------------------------------------------------
# Deterministic parameter initialization (synthetic weights, no checkpoint)
# ----------------------------------------------------------------------------
def _init_linear(key, fan_in, fan_out):
    kw, kb = jax.random.split(key)
    scale = 1.0 / jnp.sqrt(jnp.float32(fan_in))
    w = jax.random.uniform(kw, (fan_in, fan_out), jnp.float32, -scale, scale)
    b = jax.random.uniform(kb, (fan_out,), jnp.float32, -scale, scale)
    return w, b


def init_params(o_dim, z_dim=20, h_dim=256, a_dim=1, use_act=True, seed=42):
    keys = jax.random.split(jax.random.PRNGKey(seed), 6)
    params = {}
    params["enc_w1"], params["enc_b1"] = _init_linear(keys[0], o_dim, h_dim)
    params["enc_w2"], params["enc_b2"] = _init_linear(keys[1], h_dim, z_dim)
    params["dec_w1"], params["dec_b1"] = _init_linear(keys[2], z_dim, h_dim)
    params["dec_w2"], params["dec_b2"] = _init_linear(keys[3], h_dim, o_dim)
    rw_in = z_dim + a_dim if use_act else z_dim            # no-act head: z only
    params["rw_w1"], params["rw_b1"] = _init_linear(keys[4], rw_in, h_dim)
    params["rw_w2"], params["rw_b2"] = _init_linear(keys[5], h_dim, 1)
    return params


def pack_params(params):
    """Pad small dims to lane-aligned sizes, cast weights to bf16 (once)."""
    bf16, f32 = jnp.bfloat16, jnp.float32

    def pad_cols(w, n):
        return jnp.pad(w, ((0, 0), (0, n - w.shape[1])))

    def pad_rows(w, n):
        return jnp.pad(w, ((0, n - w.shape[0]), (0, 0)))

    return dict(
        ew1=params["enc_w1"].astype(bf16),
        eb1=params["enc_b1"].reshape(1, -1).astype(f32),
        ew2=pad_cols(params["enc_w2"], ZP).astype(bf16),
        eb2=pad_cols(params["enc_b2"].reshape(1, -1), ZP).astype(f32),
        dw1=pad_rows(params["dec_w1"], ZP).astype(bf16),
        db1=params["dec_b1"].reshape(1, -1).astype(f32),
        dw2=params["dec_w2"].astype(bf16),
        db2=params["dec_b2"].reshape(1, -1).astype(f32),
        rw1=pad_rows(params["rw_w1"], ZP).astype(bf16),
        rb1=params["rw_b1"].reshape(1, -1).astype(f32),
        rw2=pad_cols(params["rw_w2"], RP).astype(bf16),
        rb2=pad_cols(params["rw_b2"].reshape(1, -1), RP).astype(f32),
    )


# ----------------------------------------------------------------------------
# Module forward: single fused pallas_call
# ----------------------------------------------------------------------------
def ae_deterministic_rw_forward(packed, o, a, o_next, *, z_dim=20,
                                use_act=True):
    """Mirrors AE_DeterministicRW.forward: returns (z, o_rec, r)."""
    B = o.shape[0]
    o_dim = 1
    for d in o.shape[1:]:
        o_dim *= d
    h_dim = packed["ew1"].shape[1]

    # Pad batch rows to a multiple of 8 sublanes -> full-tile stores and a
    # tile-aligned z / z_next split inside the kernel.
    BP = max(8, ((B + 7) // 8) * 8)

    def pad_rows(x, n):
        return jnp.pad(x, ((0, n - x.shape[0]), (0, 0)))

    # batched encoder input: [o; o_next] -> (2*BP, o_dim), bf16 for the MXU
    o_both = jnp.concatenate(
        [pad_rows(o.reshape(B, -1), BP), pad_rows(o_next.reshape(B, -1), BP)],
        axis=0,
    ).astype(jnp.bfloat16)

    # action injected at column z_dim of a zero-padded (BP, ZP) slab
    a_pad = jnp.zeros((BP, ZP), jnp.float32)
    if use_act:
        a_pad = a_pad.at[:B, z_dim:z_dim + a.shape[1]].set(
            a.astype(jnp.float32))

    kernel = functools.partial(_fused_ae_kernel, batch=BP, use_act=use_act)

    in_arrays = (
        o_both, a_pad,
        packed["ew1"], packed["eb1"], packed["ew2"], packed["eb2"],
        packed["dw1"], packed["db1"], packed["dw2"], packed["db2"],
        packed["rw1"], packed["rb1"], packed["rw2"], packed["rb2"],
    )

    z_pad, o_rec_flat, r_pad = pl.pallas_call(
        kernel,
        out_shape=(
            jax.ShapeDtypeStruct((BP, ZP), jnp.float32),
            jax.ShapeDtypeStruct((BP, o_dim), jnp.float32),
            jax.ShapeDtypeStruct((BP, RP), jnp.float32),
        ),
        grid=(1,),
        in_specs=[
            _vmem_spec((2 * BP, o_dim)),         # o_both
            _vmem_spec((BP, ZP)),                # a_pad
            _vmem_spec((o_dim, h_dim)),          # enc_w1
            _vmem_spec((1, h_dim)),              # enc_b1
            _vmem_spec((h_dim, ZP)),             # enc_w2
            _vmem_spec((1, ZP)),                 # enc_b2
            _vmem_spec((ZP, h_dim)),             # dec_w1
            _vmem_spec((1, h_dim)),              # dec_b1
            _vmem_spec((h_dim, o_dim)),          # dec_w2
            _vmem_spec((1, o_dim)),              # dec_b2
            _vmem_spec((ZP, h_dim)),             # rw_w1
            _vmem_spec((1, h_dim)),              # rw_b1
            _vmem_spec((h_dim, RP)),             # rw_w2
            _vmem_spec((1, RP)),                 # rw_b2
        ],
        out_specs=[
            _vmem_spec((BP, ZP)),
            _vmem_spec((BP, o_dim)),
            _vmem_spec((BP, RP)),
        ],
        compiler_params=pltpu.CompilerParams(
            dimension_semantics=("arbitrary",),
            vmem_limit_bytes=64 * 1024 * 1024,
        ),
    )(*in_arrays)

    z = z_pad[:B, :z_dim]
    o_rec = o_rec_flat[:B].reshape(o.shape)
    r = r_pad[:B, :1]
    return z, o_rec, r


# ----------------------------------------------------------------------------
# Pure-JAX f32 reference (for a loose sanity check of the fused kernel)
# ----------------------------------------------------------------------------
def reference_forward(params, o, a, o_next, use_act=True):
    B = o.shape[0]
    of, onf = o.reshape(B, -1), o_next.reshape(B, -1)

    def lin(x, w, b):
        return x @ w + b

    def enc(x):
        h = jax.nn.relu(lin(x, params["enc_w1"], params["enc_b1"]))
        return lin(h, params["enc_w2"], params["enc_b2"])

    z, z_next = enc(of), enc(onf)
    rw_in = jnp.concatenate([z, a], axis=-1) if use_act else z_next
    hr = jax.nn.relu(lin(rw_in, params["rw_w1"], params["rw_b1"]))
    r = lin(hr, params["rw_w2"], params["rw_b2"])
    hd = jax.nn.relu(lin(z, params["dec_w1"], params["dec_b1"]))
    o_rec = lin(hd, params["dec_w2"], params["dec_b2"]).reshape(o.shape)
    return z, o_rec, r


# ----------------------------------------------------------------------------
if __name__ == "__main__":
    B, C, H, W = 2, 4, 16, 16
    z_dim, h_dim, a_dim = 20, 256, 1
    o_dim = C * H * W

    key = jax.random.PRNGKey(0)
    k_o, k_a, k_on = jax.random.split(key, 3)
    o = jax.random.normal(k_o, (B, C, H, W), jnp.float32)
    a = jax.random.normal(k_a, (B, a_dim), jnp.float32)
    o_next = jax.random.normal(k_on, (B, C, H, W), jnp.float32)

    params = init_params(o_dim, z_dim=z_dim, h_dim=h_dim, a_dim=a_dim,
                         use_act=True, seed=42)
    packed = jax.tree.map(jax.block_until_ready, pack_params(params))

    fwd = jax.jit(functools.partial(ae_deterministic_rw_forward,
                                    z_dim=z_dim, use_act=True))
    z, o_rec, r = fwd(packed, o, a, o_next)
    jax.block_until_ready((z, o_rec, r))

    assert z.shape == (B, z_dim)
    assert o_rec.shape == (B, C, H, W)
    assert r.shape == (B, 1)

    # loose correctness check vs f32 reference (bf16 MXU inputs => ~1e-2 err)
    z_ref, o_rec_ref, r_ref = reference_forward(params, o, a, o_next, True)
    max_err = max(
        float(jnp.max(jnp.abs(z - z_ref))),
        float(jnp.max(jnp.abs(o_rec - o_rec_ref))),
        float(jnp.max(jnp.abs(r - r_ref))),
    )
    assert max_err < 0.1, f"max abs error {max_err} too large"

    print("KERNEL_OK")
</pallas_src>

<mosaic_0001>
module attributes {stable_mosaic.version = 11 : i64} {
  func.func @_fused_ae_kernel(%arg0: i32, %arg1: memref<16x1024xbf16, #tpu.memory_space<vmem>>, %arg2: memref<8x128xf32, #tpu.memory_space<vmem>>, %arg3: memref<1024x256xbf16, #tpu.memory_space<vmem>>, %arg4: memref<1x256xf32, #tpu.memory_space<vmem>>, %arg5: memref<256x128xbf16, #tpu.memory_space<vmem>>, %arg6: memref<1x128xf32, #tpu.memory_space<vmem>>, %arg7: memref<128x256xbf16, #tpu.memory_space<vmem>>, %arg8: memref<1x256xf32, #tpu.memory_space<vmem>>, %arg9: memref<256x1024xbf16, #tpu.memory_space<vmem>>, %arg10: memref<1x1024xf32, #tpu.memory_space<vmem>>, %arg11: memref<128x256xbf16, #tpu.memory_space<vmem>>, %arg12: memref<1x256xf32, #tpu.memory_space<vmem>>, %arg13: memref<256x128xbf16, #tpu.memory_space<vmem>>, %arg14: memref<1x128xf32, #tpu.memory_space<vmem>>, %arg15: memref<8x128xf32, #tpu.memory_space<vmem>>, %arg16: memref<8x1024xf32, #tpu.memory_space<vmem>>, %arg17: memref<8x128xf32, #tpu.memory_space<vmem>>) attributes {dimension_semantics = [#tpu.dimension_semantics<arbitrary>], iteration_bounds = array<i64: 1>, scalar_prefetch = 0 : i64, scratch_operands = 0 : i64, tpu.core_type = #tpu.core_type<tc>, window_params = [{pipeline_mode = #tpu.pipeline_mode<synchronous>, transform_indices = @transform_0, window_bounds = array<i64: 16, 1024>}, {pipeline_mode = #tpu.pipeline_mode<synchronous>, transform_indices = @transform_1, window_bounds = array<i64: 8, 128>}, {pipeline_mode = #tpu.pipeline_mode<synchronous>, transform_indices = @transform_2, window_bounds = array<i64: 1024, 256>}, {pipeline_mode = #tpu.pipeline_mode<synchronous>, transform_indices = @transform_3, window_bounds = array<i64: 1, 256>}, {pipeline_mode = #tpu.pipeline_mode<synchronous>, transform_indices = @transform_4, window_bounds = array<i64: 256, 128>}, {pipeline_mode = #tpu.pipeline_mode<synchronous>, transform_indices = @transform_5, window_bounds = array<i64: 1, 128>}, {pipeline_mode = #tpu.pipeline_mode<synchronous>, transform_indices = @transform_6, window_bounds = array<i64: 128, 256>}, {pipeline_mode = #tpu.pipeline_mode<synchronous>, transform_indices = @transform_7, window_bounds = array<i64: 1, 256>}, {pipeline_mode = #tpu.pipeline_mode<synchronous>, transform_indices = @transform_8, window_bounds = array<i64: 256, 1024>}, {pipeline_mode = #tpu.pipeline_mode<synchronous>, transform_indices = @transform_9, window_bounds = array<i64: 1, 1024>}, {pipeline_mode = #tpu.pipeline_mode<synchronous>, transform_indices = @transform_10, window_bounds = array<i64: 128, 256>}, {pipeline_mode = #tpu.pipeline_mode<synchronous>, transform_indices = @transform_11, window_bounds = array<i64: 1, 256>}, {pipeline_mode = #tpu.pipeline_mode<synchronous>, transform_indices = @transform_12, window_bounds = array<i64: 256, 128>}, {pipeline_mode = #tpu.pipeline_mode<synchronous>, transform_indices = @transform_13, window_bounds = array<i64: 1, 128>}, {pipeline_mode = #tpu.pipeline_mode<synchronous>, transform_indices = @transform_14, window_bounds = array<i64: 8, 128>}, {pipeline_mode = #tpu.pipeline_mode<synchronous>, transform_indices = @transform_15, window_bounds = array<i64: 8, 1024>}, {pipeline_mode = #tpu.pipeline_mode<synchronous>, transform_indices = @transform_16, window_bounds = array<i64: 8, 128>}]} {
    %c0 = arith.constant 0 : index
    %c0_0 = arith.constant 0 : index
    %0 = vector.load %arg1[%c0, %c0_0] : memref<16x1024xbf16, #tpu.memory_space<vmem>>, vector<16x1024xbf16>
    %c0_1 = arith.constant 0 : index
    %c0_2 = arith.constant 0 : index
    %1 = vector.load %arg3[%c0_1, %c0_2] : memref<1024x256xbf16, #tpu.memory_space<vmem>>, vector<1024x256xbf16>
    %cst = arith.constant dense<0.000000e+00> : vector<16x256xf32>
    %2 = tpu.matmul %0, %1, %cst {dimension_numbers = #tpu.dot_dimension_numbers<[1], [0], [0], [1], [0, 0, 1, 1], [], []>} : vector<16x1024xbf16>, vector<1024x256xbf16>, vector<16x256xf32> -> vector<16x256xf32>
    %c0_3 = arith.constant 0 : index
    %c0_4 = arith.constant 0 : index
    %3 = vector.load %arg4[%c0_3, %c0_4] : memref<1x256xf32, #tpu.memory_space<vmem>>, vector<1x256xf32>
    %4 = vector.broadcast %3 : vector<1x256xf32> to vector<16x256xf32>
    %5 = arith.addf %2, %4 : vector<16x256xf32>
    %cst_5 = arith.constant 0.000000e+00 : f32
    %6 = vector.broadcast %cst_5 : f32 to vector<16x256xf32>
    %7 = arith.maximumf %5, %6 : vector<16x256xf32>
    %8 = arith.truncf %7 : vector<16x256xf32> to vector<16x256xbf16>
    %c0_6 = arith.constant 0 : index
    %c0_7 = arith.constant 0 : index
    %9 = vector.load %arg5[%c0_6, %c0_7] : memref<256x128xbf16, #tpu.memory_space<vmem>>, vector<256x128xbf16>
    %cst_8 = arith.constant dense<0.000000e+00> : vector<16x128xf32>
    %10 = tpu.matmul %8, %9, %cst_8 {dimension_numbers = #tpu.dot_dimension_numbers<[1], [0], [0], [1], [0, 0, 1, 1], [], []>} : vector<16x256xbf16>, vector<256x128xbf16>, vector<16x128xf32> -> vector<16x128xf32>
    %c0_9 = arith.constant 0 : index
    %c0_10 = arith.constant 0 : index
    %11 = vector.load %arg6[%c0_9, %c0_10] : memref<1x128xf32, #tpu.memory_space<vmem>>, vector<1x128xf32>
    %12 = vector.broadcast %11 : vector<1x128xf32> to vector<16x128xf32>
    %13 = arith.addf %10, %12 : vector<16x128xf32>
    %14 = vector.extract_strided_slice %13 {offsets = [0, 0], sizes = [8, 128], strides = [1, 1]} : vector<16x128xf32> to vector<8x128xf32>
    %c0_11 = arith.constant 0 : index
    %c0_12 = arith.constant 0 : index
    %15 = vector.load %arg15[%c0_11, %c0_12] : memref<8x128xf32, #tpu.memory_space<vmem>>, vector<8x128xf32>
    tpu.vector_store %arg15[%c0_11, %c0_12], %14 {strides = array<i32>} : memref<8x128xf32, #tpu.memory_space<vmem>>, vector<8x128xf32>,
    %c0_13 = arith.constant 0 : index
    %c0_14 = arith.constant 0 : index
    %16 = vector.load %arg2[%c0_13, %c0_14] : memref<8x128xf32, #tpu.memory_space<vmem>>, vector<8x128xf32>
    %17 = arith.addf %14, %16 : vector<8x128xf32>
    %18 = arith.truncf %17 : vector<8x128xf32> to vector<8x128xbf16>
    %c0_15 = arith.constant 0 : index
    %c0_16 = arith.constant 0 : index
    %19 = vector.load %arg11[%c0_15, %c0_16] : memref<128x256xbf16, #tpu.memory_space<vmem>>, vector<128x256xbf16>
    %cst_17 = arith.constant dense<0.000000e+00> : vector<8x256xf32>
    %20 = tpu.matmul %18, %19, %cst_17 {dimension_numbers = #tpu.dot_dimension_numbers<[1], [0], [0], [1], [0, 0, 1, 1], [], []>} : vector<8x128xbf16>, vector<128x256xbf16>, vector<8x256xf32> -> vector<8x256xf32>
    %c0_18 = arith.constant 0 : index
    %c0_19 = arith.constant 0 : index
    %21 = vector.load %arg12[%c0_18, %c0_19] : memref<1x256xf32, #tpu.memory_space<vmem>>, vector<1x256xf32>
    %22 = vector.broadcast %21 : vector<1x256xf32> to vector<8x256xf32>
    %23 = arith.addf %20, %22 : vector<8x256xf32>
    %cst_20 = arith.constant 0.000000e+00 : f32
    %24 = vector.broadcast %cst_20 : f32 to vector<8x256xf32>
    %25 = arith.maximumf %23, %24 : vector<8x256xf32>
    %26 = arith.truncf %25 : vector<8x256xf32> to vector<8x256xbf16>
    %c0_21 = arith.constant 0 : index
    %c0_22 = arith.constant 0 : index
    %27 = vector.load %arg13[%c0_21, %c0_22] : memref<256x128xbf16, #tpu.memory_space<vmem>>, vector<256x128xbf16>
    %cst_23 = arith.constant dense<0.000000e+00> : vector<8x128xf32>
    %28 = tpu.matmul %26, %27, %cst_23 {dimension_numbers = #tpu.dot_dimension_numbers<[1], [0], [0], [1], [0, 0, 1, 1], [], []>} : vector<8x256xbf16>, vector<256x128xbf16>, vector<8x128xf32> -> vector<8x128xf32>
    %c0_24 = arith.constant 0 : index
    %c0_25 = arith.constant 0 : index
    %29 = vector.load %arg14[%c0_24, %c0_25] : memref<1x128xf32, #tpu.memory_space<vmem>>, vector<1x128xf32>
    %30 = vector.broadcast %29 : vector<1x128xf32> to vector<8x128xf32>
    %31 = arith.addf %28, %30 : vector<8x128xf32>
    %c0_26 = arith.constant 0 : index
    %c0_27 = arith.constant 0 : index
    %32 = vector.load %arg17[%c0_26, %c0_27] : memref<8x128xf32, #tpu.memory_space<vmem>>, vector<8x128xf32>
    tpu.vector_store %arg17[%c0_26, %c0_27], %31 {strides = array<i32>} : memref<8x128xf32, #tpu.memory_space<vmem>>, vector<8x128xf32>,
    %33 = arith.truncf %14 : vector<8x128xf32> to vector<8x128xbf16>
    %c0_28 = arith.constant 0 : index
    %c0_29 = arith.constant 0 : index
    %34 = vector.load %arg7[%c0_28, %c0_29] : memref<128x256xbf16, #tpu.memory_space<vmem>>, vector<128x256xbf16>
    %cst_30 = arith.constant dense<0.000000e+00> : vector<8x256xf32>
    %35 = tpu.matmul %33, %34, %cst_30 {dimension_numbers = #tpu.dot_dimension_numbers<[1], [0], [0], [1], [0, 0, 1, 1], [], []>} : vector<8x128xbf16>, vector<128x256xbf16>, vector<8x256xf32> -> vector<8x256xf32>
    %c0_31 = arith.constant 0 : index
    %c0_32 = arith.constant 0 : index
    %36 = vector.load %arg8[%c0_31, %c0_32] : memref<1x256xf32, #tpu.memory_space<vmem>>, vector<1x256xf32>
    %37 = vector.broadcast %36 : vector<1x256xf32> to vector<8x256xf32>
    %38 = arith.addf %35, %37 : vector<8x256xf32>
    %cst_33 = arith.constant 0.000000e+00 : f32
    %39 = vector.broadcast %cst_33 : f32 to vector<8x256xf32>
    %40 = arith.maximumf %38, %39 : vector<8x256xf32>
    %41 = arith.truncf %40 : vector<8x256xf32> to vector<8x256xbf16>
    %c0_34 = arith.constant 0 : index
    %c0_35 = arith.constant 0 : index
    %42 = vector.load %arg9[%c0_34, %c0_35] : memref<256x1024xbf16, #tpu.memory_space<vmem>>, vector<256x1024xbf16>
    %cst_36 = arith.constant dense<0.000000e+00> : vector<8x1024xf32>
    %43 = tpu.matmul %41, %42, %cst_36 {dimension_numbers = #tpu.dot_dimension_numbers<[1], [0], [0], [1], [0, 0, 1, 1], [], []>} : vector<8x256xbf16>, vector<256x1024xbf16>, vector<8x1024xf32> -> vector<8x1024xf32>
    %c0_37 = arith.constant 0 : index
    %c0_38 = arith.constant 0 : index
    %44 = vector.load %arg10[%c0_37, %c0_38] : memref<1x1024xf32, #tpu.memory_space<vmem>>, vector<1x1024xf32>
    %45 = vector.broadcast %44 : vector<1x1024xf32> to vector<8x1024xf32>
    %46 = arith.addf %43, %45 : vector<8x1024xf32>
    %c0_39 = arith.constant 0 : index
    %c0_40 = arith.constant 0 : index
    %47 = vector.load %arg16[%c0_39, %c0_40] : memref<8x1024xf32, #tpu.memory_space<vmem>>, vector<8x1024xf32>
    tpu.vector_store %arg16[%c0_39, %c0_40], %46 {strides = array<i32>} : memref<8x1024xf32, #tpu.memory_space<vmem>>, vector<8x1024xf32>,
    return
  }
  func.func @transform_0(%arg0: i32) -> (i32, i32) {
    %c0_i32 = arith.constant 0 : i32
    %c0_i32_0 = arith.constant 0 : i32
    %c0_i32_1 = arith.constant 0 : i32
    return %c0_i32, %c0_i32_0 : i32, i32
  }
  func.func @transform_1(%arg0: i32) -> (i32, i32) {
    %c0_i32 = arith.constant 0 : i32
    %c0_i32_0 = arith.constant 0 : i32
    %c0_i32_1 = arith.constant 0 : i32
    return %c0_i32, %c0_i32_0 : i32, i32
  }
  func.func @transform_2(%arg0: i32) -> (i32, i32) {
    %c0_i32 = arith.constant 0 : i32
    %c0_i32_0 = arith.constant 0 : i32
    %c0_i32_1 = arith.constant 0 : i32
    return %c0_i32, %c0_i32_0 : i32, i32
  }
  func.func @transform_3(%arg0: i32) -> (i32, i32) {
    %c0_i32 = arith.constant 0 : i32
    %c0_i32_0 = arith.constant 0 : i32
    %c0_i32_1 = arith.constant 0 : i32
    return %c0_i32, %c0_i32_0 : i32, i32
  }
  func.func @transform_4(%arg0: i32) -> (i32, i32) {
    %c0_i32 = arith.constant 0 : i32
    %c0_i32_0 = arith.constant 0 : i32
    %c0_i32_1 = arith.constant 0 : i32
    return %c0_i32, %c0_i32_0 : i32, i32
  }
  func.func @transform_5(%arg0: i32) -> (i32, i32) {
    %c0_i32 = arith.constant 0 : i32
    %c0_i32_0 = arith.constant 0 : i32
    %c0_i32_1 = arith.constant 0 : i32
    return %c0_i32, %c0_i32_0 : i32, i32
  }
  func.func @transform_6(%arg0: i32) -> (i32, i32) {
    %c0_i32 = arith.constant 0 : i32
    %c0_i32_0 = arith.constant 0 : i32
    %c0_i32_1 = arith.constant 0 : i32
    return %c0_i32, %c0_i32_0 : i32, i32
  }
  func.func @transform_7(%arg0: i32) -> (i32, i32) {
    %c0_i32 = arith.constant 0 : i32
    %c0_i32_0 = arith.constant 0 : i32
    %c0_i32_1 = arith.constant 0 : i32
    return %c0_i32, %c0_i32_0 : i32, i32
  }
  func.func @transform_8(%arg0: i32) -> (i32, i32) {
    %c0_i32 = arith.constant 0 : i32
    %c0_i32_0 = arith.constant 0 : i32
    %c0_i32_1 = arith.constant 0 : i32
    return %c0_i32, %c0_i32_0 : i32, i32
  }
  func.func @transform_9(%arg0: i32) -> (i32, i32) {
    %c0_i32 = arith.constant 0 : i32
    %c0_i32_0 = arith.constant 0 : i32
    %c0_i32_1 = arith.constant 0 : i32
    return %c0_i32, %c0_i32_0 : i32, i32
  }
  func.func @transform_10(%arg0: i32) -> (i32, i32) {
    %c0_i32 = arith.constant 0 : i32
    %c0_i32_0 = arith.constant 0 : i32
    %c0_i32_1 = arith.constant 0 : i32
    return %c0_i32, %c0_i32_0 : i32, i32
  }
  func.func @transform_11(%arg0: i32) -> (i32, i32) {
    %c0_i32 = arith.constant 0 : i32
    %c0_i32_0 = arith.constant 0 : i32
    %c0_i32_1 = arith.constant 0 : i32
    return %c0_i32, %c0_i32_0 : i32, i32
  }
  func.func @transform_12(%arg0: i32) -> (i32, i32) {
    %c0_i32 = arith.constant 0 : i32
    %c0_i32_0 = arith.constant 0 : i32
    %c0_i32_1 = arith.constant 0 : i32
    return %c0_i32, %c0_i32_0 : i32, i32
  }
  func.func @transform_13(%arg0: i32) -> (i32, i32) {
    %c0_i32 = arith.constant 0 : i32
    %c0_i32_0 = arith.constant 0 : i32
    %c0_i32_1 = arith.constant 0 : i32
    return %c0_i32, %c0_i32_0 : i32, i32
  }
  func.func @transform_14(%arg0: i32) -> (i32, i32) {
    %c0_i32 = arith.constant 0 : i32
    %c0_i32_0 = arith.constant 0 : i32
    %c0_i32_1 = arith.constant 0 : i32
    return %c0_i32, %c0_i32_0 : i32, i32
  }
  func.func @transform_15(%arg0: i32) -> (i32, i32) {
    %c0_i32 = arith.constant 0 : i32
    %c0_i32_0 = arith.constant 0 : i32
    %c0_i32_1 = arith.constant 0 : i32
    return %c0_i32, %c0_i32_0 : i32, i32
  }
  func.func @transform_16(%arg0: i32) -> (i32, i32) {
    %c0_i32 = arith.constant 0 : i32
    %c0_i32_0 = arith.constant 0 : i32
    %c0_i32_1 = arith.constant 0 : i32
    return %c0_i32, %c0_i32_0 : i32, i32
  }
}

</mosaic_0001>

<bundles_post_ra>
// kernel: ae_deterministic_rw_forward.1
= control target key start
LH: loop header
LB: loop body
LE: loop exit
PB: predicated region body
PF: predicated region fallthrough
CT: control target
= control target key end

     0   :  { %s4408_s0 = inlined_call_operand.hbm [shape: bf16[16,1024], index: 0, kind: input, shape index: {}]   ;;  %s4409_s1 = inlined_call_operand.hbm [shape: f32[8,128], index: 1, kind: input, shape index: {}]   ;;  %s4410_s2 = inlined_call_operand.hbm [shape: bf16[1024,256], index: 2, kind: input, shape index: {}]   ;;  %s4411_s3 = inlined_call_operand.hbm [shape: f32[1,256], index: 3, kind: input, shape index: {}]   ;;  %s4412_s4 = inlined_call_operand.hbm [shape: bf16[256,128], index: 4, kind: input, shape index: {}]   ;;  %s4413_s5 = inlined_call_operand.hbm [shape: f32[1,128], index: 5, kind: input, shape index: {}]   ;;  %s4414_s6 = inlined_call_operand.hbm [shape: bf16[128,256], index: 6, kind: input, shape index: {}]   ;;  %s4415_s7 = inlined_call_operand.hbm [shape: f32[1,256], index: 7, kind: input, shape index: {}]   ;;  %s4416_s8 = inlined_call_operand.hbm [shape: bf16[256,1024], index: 8, kind: input, shape index: {}]   ;;  %s4417_s9 = inlined_call_operand.hbm [shape: f32[1,1024], index: 9, kind: input, shape index: {}]   ;;  %s4418_s10 = inlined_call_operand.hbm [shape: bf16[128,256], index: 10, kind: input, shape index: {}]   ;;  %s4419_s11 = inlined_call_operand.hbm [shape: f32[1,256], index: 11, kind: input, shape index: {}]   ;;  %s4420_s12 = inlined_call_operand.hbm [shape: bf16[256,128], index: 12, kind: input, shape index: {}]   ;;  %s4421_s13 = inlined_call_operand.hbm [shape: f32[1,128], index: 13, kind: input, shape index: {}]   ;;  %s4422_s14 = inlined_call_operand.hbm [shape: f32[8,128], index: 14, kind: output, shape index: {0}]   ;;  %s4423_s15 = inlined_call_operand.hbm [shape: f32[8,1024], index: 15, kind: output, shape index: {1}]   ;;  %s4424_s16 = inlined_call_operand.hbm [shape: f32[8,128], index: 16, kind: output, shape index: {2}]  }
   0x1   :  { %4426 = sst [smem:[#allocation39_spill]] %s4408_s0 }
   0x2   :  { %22 = vsyncpa [#allocation3], 0 }
   0x3   :  { %23 = vsyncpa [#allocation6], 0 }
   0x4   :  { %24 = vsyncpa [#allocation9], 0 }
   0x5   :  { %25 = vsyncpa [#allocation12], 0 }
   0x6   :  { %26 = vsyncpa [#allocation15], 0 }
   0x7   :  { %27 = vsyncpa [#allocation18], 0 }
   0x8   :  { %28 = vsyncpa [#allocation21], 0 }
   0x9   :  { %29 = vsyncpa [#allocation24], 0 }
   0xa   :  { %30 = vsyncpa [#allocation4], 0 }
   0xb   :  { %31 = vsyncpa [#allocation27], 0  ;;  %s4008_s21 = smov [#allocation5]   ;;  %s4009_s23 = smov [#allocation8]  }
   0xc   :  { %s50_s22 = sshll.u32 %s4008_s21, 4  ;;  %s72_s24 = sshll.u32 %s4009_s23, 4  ;;  %s51_s22 = int_to_ptr.vmem [resolvable:$true] %s50_s22  ;;  %s73_s24 = int_to_ptr.vmem [resolvable:$true] %s72_s24 }
   0xd   :  { %s3614_s27 = scalar_lea.hbm %s4409_s1, 128 }
   0xe   :  { %p3615_p0 = scmp.ne.s32.totalorder %s4409_s1, %s3614_s27  ;;  %p3618_p1 = scmp.lt.u32.totalorder %s3614_s27, %s4409_s1 }
  0x10   :  { %p3620_p2 = pnand %p3618_p1, %p3615_p0 }
  0x12   :  { %3623 = shalt.err (!%p3620_p2)
}
  0x13   :  { %s3624_s17 = scalar_lea.vmem %s51_s22, 128  ;;  %p3629_p4 = scmp.lt.s32.totalorder %s51_s22, %s51_s22 }
  0x14   :  { %p3625_p3 = scmp.ne.s32.totalorder %s51_s22, %s3624_s17  ;;  %p3630_p5 = scmp.lt.s32.totalorder %s3624_s17, %s3624_s17 }
  0x16   :  { %p3631_p6 = por %p3630_p5, %p3629_p4 }
  0x18   :  { %p3632_p7 = pnand %p3631_p6, %p3625_p3 }
  0x1a   :  { %3635 = shalt.err (!%p3632_p7)
}
  0x1b   :  { %53 = dma.hbm_to_vmem [thread:$0]  %s4409_s1, 128, %s51_s22, [#allocation6]  }
  0x1c   :  { %s3636_s23 = scalar_lea.hbm %s4411_s3, 32 }
  0x1d   :  { %p3637_p8 = scmp.ne.s32.totalorder %s4411_s3, %s3636_s23  ;;  %p3640_p9 = scmp.lt.u32.totalorder %s3636_s23, %s4411_s3 }
  0x1f   :  { %p3642_p10 = pnand %p3640_p9, %p3637_p8 }
  0x21   :  { %3645 = shalt.err (!%p3642_p10)
}
  0x22   :  { %s3646_s29 = scalar_lea.vmem %s73_s24, 32  ;;  %p3651_p12 = scmp.lt.s32.totalorder %s73_s24, %s73_s24 }
  0x23   :  { %p3647_p11 = scmp.ne.s32.totalorder %s73_s24, %s3646_s29  ;;  %p3652_p13 = scmp.lt.s32.totalorder %s3646_s29, %s3646_s29 }
  0x25   :  { %p3653_p0 = por %p3652_p13, %p3651_p12 }
  0x27   :  { %p3654_p1 = pnand %p3653_p0, %p3647_p11 }
  0x29   :  { %3657 = shalt.err (!%p3654_p1)
}
  0x2a   :  { %75 = dma.hbm_to_vmem [thread:$0]  %s4411_s3, 32, %s73_s24, [#allocation9]  }
  0x2b   :  { %s4010_s30 = smov [#allocation11]   ;;  %s4011_s17 = smov [#allocation14]  }
  0x2c   :  { %s94_s0 = sshll.u32 %s4010_s30, 4  ;;  %s116_s18 = sshll.u32 %s4011_s17, 4  ;;  %s95_s0 = int_to_ptr.vmem [resolvable:$true] %s94_s0  ;;  %s117_s18 = int_to_ptr.vmem [resolvable:$true] %s116_s18 }
  0x2d   :  { %s3658_s21 = scalar_lea.hbm %s4413_s5, 16 }
  0x2e   :  { %p3659_p2 = scmp.ne.s32.totalorder %s4413_s5, %s3658_s21  ;;  %p3662_p3 = scmp.lt.u32.totalorder %s3658_s21, %s4413_s5 }
  0x30   :  { %p3664_p4 = pnand %p3662_p3, %p3659_p2 }
  0x32   :  { %3667 = shalt.err (!%p3664_p4)
}
  0x33   :  { %s3668_s3 = scalar_lea.vmem %s95_s0, 16  ;;  %s3672_s24 = scalar_lea.vmem %s95_s0, 32 }
  0x34   :  { %p3669_p5 = scmp.ne.s32.totalorder %s95_s0, %s3668_s3  ;;  %p3673_p6 = scmp.lt.s32.totalorder %s95_s0, %s95_s0 }
  0x35   :  { %p3674_p7 = scmp.lt.s32.totalorder %s3672_s24, %s3668_s3 }
  0x37   :  { %p3675_p8 = por %p3674_p7, %p3673_p6 }
  0x39   :  { %p3676_p9 = pnand %p3675_p8, %p3669_p5 }
  0x3b   :  { %3679 = shalt.err (!%p3676_p9)
}
  0x3c   :  { %97 = dma.hbm_to_vmem [thread:$0]  %s4413_s5, 16, %s95_s0, [#allocation12]  }
  0x3d   :  { %s3680_s30 = scalar_lea.hbm %s4415_s7, 32 }
  0x3e   :  { %p3681_p10 = scmp.ne.s32.totalorder %s4415_s7, %s3680_s30  ;;  %p3684_p11 = scmp.lt.u32.totalorder %s3680_s30, %s4415_s7 }
  0x40   :  { %p3686_p12 = pnand %p3684_p11, %p3681_p10 }
  0x42   :  { %3689 = shalt.err (!%p3686_p12)
}
  0x43   :  { %s3690_s23 = scalar_lea.vmem %s117_s18, 32  ;;  %p3695_p0 = scmp.lt.s32.totalorder %s117_s18, %s117_s18 }
  0x44   :  { %p3691_p13 = scmp.ne.s32.totalorder %s117_s18, %s3690_s23  ;;  %p3696_p1 = scmp.lt.s32.totalorder %s3690_s23, %s3690_s23 }
  0x46   :  { %p3697_p2 = por %p3696_p1, %p3695_p0 }
  0x48   :  { %p3698_p3 = pnand %p3697_p2, %p3691_p13 }
  0x4a   :  { %3701 = shalt.err (!%p3698_p3)
}
  0x4b   :  { %119 = dma.hbm_to_vmem [thread:$0]  %s4415_s7, 32, %s117_s18, [#allocation15]  }
  0x4c   :  { %s4012_s25 = smov [#allocation17]   ;;  %s4013_s27 = smov [#allocation20]  }
  0x4d   :  { %s138_s26 = sshll.u32 %s4012_s25, 4  ;;  %s160_s3 = sshll.u32 %s4013_s27, 4  ;;  %s139_s26 = int_to_ptr.vmem [resolvable:$true] %s138_s26  ;;  %s161_s3 = int_to_ptr.vmem [resolvable:$true] %s160_s3 }
  0x4e   :  { %s3702_s29 = scalar_lea.hbm %s4417_s9, 128 }
  0x4f   :  { %p3703_p4 = scmp.ne.s32.totalorder %s4417_s9, %s3702_s29  ;;  %p3706_p5 = scmp.lt.u32.totalorder %s3702_s29, %s4417_s9 }
  0x51   :  { %p3708_p6 = pnand %p3706_p5, %p3703_p4 }
  0x53   :  { %3711 = shalt.err (!%p3708_p6)
}
  0x54   :  { %s3712_s7 = scalar_lea.vmem %s139_s26, 128  ;;  %p3717_p8 = scmp.lt.s32.totalorder %s139_s26, %s139_s26 }
  0x55   :  { %p3713_p7 = scmp.ne.s32.totalorder %s139_s26, %s3712_s7  ;;  %p3718_p9 = scmp.lt.s32.totalorder %s3712_s7, %s3712_s7 }
  0x57   :  { %p3719_p10 = por %p3718_p9, %p3717_p8 }
  0x59   :  { %p3720_p11 = pnand %p3719_p10, %p3713_p7 }
  0x5b   :  { %3723 = shalt.err (!%p3720_p11)
}
  0x5c   :  { %141 = dma.hbm_to_vmem [thread:$0]  %s4417_s9, 128, %s139_s26, [#allocation18]  }
  0x5d   :  { %s3724_s23 = scalar_lea.hbm %s4419_s11, 32 }
  0x5e   :  { %p3725_p12 = scmp.ne.s32.totalorder %s4419_s11, %s3724_s23  ;;  %p3728_p13 = scmp.lt.u32.totalorder %s3724_s23, %s4419_s11 }
  0x60   :  { %p3730_p0 = pnand %p3728_p13, %p3725_p12 }
  0x62   :  { %3733 = shalt.err (!%p3730_p0)
}
  0x63   :  { %s3734_s24 = scalar_lea.vmem %s161_s3, 32  ;;  %p3739_p2 = scmp.lt.s32.totalorder %s161_s3, %s161_s3 }
  0x64   :  { %p3735_p1 = scmp.ne.s32.totalorder %s161_s3, %s3734_s24  ;;  %p3740_p3 = scmp.lt.s32.totalorder %s3734_s24, %s3734_s24 }
  0x66   :  { %p3741_p4 = por %p3740_p3, %p3739_p2 }
  0x68   :  { %p3742_p5 = pnand %p3741_p4, %p3735_p1 }
  0x6a   :  { %3745 = shalt.err (!%p3742_p5)
}
  0x6b   :  { %163 = dma.hbm_to_vmem [thread:$0]  %s4419_s11, 32, %s161_s3, [#allocation21]  }
  0x6c   :  { %s4014_s28 = smov [#allocation2]   ;;  %s4427_s30 = sld [smem:[#allocation39_spill]] }
  0x6d   :  { %s37_s29 = sshll.u32 %s4014_s28, 4  ;;  %s38_s29 = int_to_ptr.vmem [resolvable:$true] %s37_s29 }
  0x72   :  { %s3746_s17 = scalar_lea.hbm %s4427_s30, 1024 }
  0x73   :  { %p3747_p6 = scmp.ne.s32.totalorder %s4427_s30, %s3746_s17  ;;  %p3750_p7 = scmp.lt.u32.totalorder %s3746_s17, %s4427_s30 }
  0x75   :  { %p3752_p8 = pnand %p3750_p7, %p3747_p6 }
  0x77   :  { %3755 = shalt.err (!%p3752_p8)
}
  0x78   :  { %s3756_s21 = scalar_lea.vmem %s38_s29, 1024  ;;  %p3761_p10 = scmp.lt.s32.totalorder %s38_s29, %s38_s29 }
  0x79   :  { %p3757_p9 = scmp.ne.s32.totalorder %s38_s29, %s3756_s21  ;;  %p3762_p11 = scmp.lt.s32.totalorder %s3756_s21, %s3756_s21 }
  0x7b   :  { %p3763_p12 = por %p3762_p11, %p3761_p10 }
  0x7d   :  { %p3764_p13 = pnand %p3763_p12, %p3757_p9 }
  0x7f   :  { %3767 = shalt.err (!%p3764_p13)
}
  0x80   :  { %s4015_s11 = smov 512   ;;  %s4016_s3 = smov 32  }
  0x81   :  { %43 = dma.hbm_to_vmem [thread:$0]  %s4427_s30, 1024, %s38_s29, [#allocation3], %s4015_s11, %s4015_s11, %s4016_s3  }
  0x82   :  { %s4017_s0 = smov [#allocation7]   ;;  %s3768_s9 = scalar_lea.hbm %s4410_s2, 16384 }
  0x83   :  { %s59_s25 = sshll.u32 %s4017_s0, 4  ;;  %p3769_p0 = scmp.ne.s32.totalorder %s4410_s2, %s3768_s9  ;;  %s60_s25 = int_to_ptr.vmem [resolvable:$true] %s59_s25 }
  0x84   :  { %p3772_p1 = scmp.lt.u32.totalorder %s3768_s9, %s4410_s2 }
  0x86   :  { %p3774_p2 = pnand %p3772_p1, %p3769_p0 }
  0x88   :  { %3777 = shalt.err (!%p3774_p2)
}
  0x89   :  { %s3778_s17 = scalar_lea.vmem %s60_s25, 16384  ;;  %p3783_p4 = scmp.lt.s32.totalorder %s60_s25, %s60_s25 }
  0x8a   :  { %p3779_p3 = scmp.ne.s32.totalorder %s60_s25, %s3778_s17  ;;  %p3784_p5 = scmp.lt.s32.totalorder %s3778_s17, %s3778_s17 }
  0x8c   :  { %p3785_p6 = por %p3784_p5, %p3783_p4 }
  0x8e   :  { %p3786_p7 = pnand %p3785_p6, %p3779_p3 }
  0x90   :  { %3789 = shalt.err (!%p3786_p7)
}
  0x91   :  { %s4018_s29 = smov 128   ;;  %s4019_s30 = smov 8  }
  0x92   :  { %65 = dma.hbm_to_vmem [thread:$0]  %s4410_s2, 16384, %s60_s25, [#allocation6], %s4018_s29, %s4018_s29, %s4019_s30  }
  0x93   :  { %s4020_s19 = smov [#allocation10]   ;;  %s3790_s5 = scalar_lea.hbm %s4412_s4, 2048 }
  0x94   :  { %s81_s20 = sshll.u32 %s4020_s19, 4  ;;  %p3791_p8 = scmp.ne.s32.totalorder %s4412_s4, %s3790_s5  ;;  %s82_s20 = int_to_ptr.vmem [resolvable:$true] %s81_s20 }
  0x95   :  { %p3794_p9 = scmp.lt.u32.totalorder %s3790_s5, %s4412_s4 }
  0x97   :  { %p3796_p10 = pnand %p3794_p9, %p3791_p8 }
  0x99   :  { %3799 = shalt.err (!%p3796_p10)
}
  0x9a   :  { %s3800_s26 = scalar_lea.vmem %s82_s20, 2048  ;;  %p3805_p12 = scmp.lt.s32.totalorder %s82_s20, %s82_s20 }
  0x9b   :  { %p3801_p11 = scmp.ne.s32.totalorder %s82_s20, %s3800_s26  ;;  %p3806_p13 = scmp.lt.s32.totalorder %s3800_s26, %s3800_s26 }
  0x9d   :  { %p3807_p0 = por %p3806_p13, %p3805_p12 }
  0x9f   :  { %p3808_p1 = pnand %p3807_p0, %p3801_p11 }
  0xa1   :  { %3811 = shalt.err (!%p3808_p1)
}
  0xa2   :  { %s4021_s2 = smov 64   ;;  %s4022_s25 = smov 4  }
  0xa3   :  { %87 = dma.hbm_to_vmem [thread:$0]  %s4412_s4, 2048, %s82_s20, [#allocation9], %s4021_s2, %s4021_s2, %s4022_s25  }
  0xa4   :  { %s4023_s22 = smov [#allocation13]   ;;  %s4024_s7 = smov [#allocation16]  }
  0xa5   :  { %s103_s17 = sshll.u32 %s4023_s22, 4  ;;  %s125_s18 = sshll.u32 %s4024_s7, 4  ;;  %s104_s17 = int_to_ptr.vmem [resolvable:$true] %s103_s17  ;;  %s126_s18 = int_to_ptr.vmem [resolvable:$true] %s125_s18 }
  0xa6   :  { %s3812_s23 = scalar_lea.hbm %s4414_s6, 2048 }
  0xa7   :  { %p3813_p2 = scmp.ne.s32.totalorder %s4414_s6, %s3812_s23  ;;  %p3816_p3 = scmp.lt.u32.totalorder %s3812_s23, %s4414_s6 }
  0xa9   :  { %p3818_p4 = pnand %p3816_p3, %p3813_p2 }
  0xab   :  { %3821 = shalt.err (!%p3818_p4)
}
  0xac   :  { %s3822_s4 = scalar_lea.vmem %s104_s17, 2048  ;;  %p3827_p6 = scmp.lt.s32.totalorder %s104_s17, %s104_s17 }
  0xad   :  { %p3823_p5 = scmp.ne.s32.totalorder %s104_s17, %s3822_s4  ;;  %p3828_p7 = scmp.lt.s32.totalorder %s3822_s4, %s3822_s4 }
  0xaf   :  { %p3829_p8 = por %p3828_p7, %p3827_p6 }
  0xb1   :  { %p3830_p9 = pnand %p3829_p8, %p3823_p5 }
  0xb3   :  { %3833 = shalt.err (!%p3830_p9)
}
  0xb4   :  { %109 = dma.hbm_to_vmem [thread:$0]  %s4414_s6, 2048, %s104_s17, [#allocation12], %s4018_s29, %s4018_s29, %s4019_s30  }
  0xb5   :  { %s3834_s1 = scalar_lea.hbm %s4416_s8, 16384 }
  0xb6   :  { %p3835_p10 = scmp.ne.s32.totalorder %s4416_s8, %s3834_s1  ;;  %p3838_p11 = scmp.lt.u32.totalorder %s3834_s1, %s4416_s8 }
  0xb8   :  { %p3840_p12 = pnand %p3838_p11, %p3835_p10 }
  0xba   :  { %3843 = shalt.err (!%p3840_p12)
}
  0xbb   :  { %s3844_s23 = scalar_lea.vmem %s126_s18, 16384  ;;  %p3849_p0 = scmp.lt.s32.totalorder %s126_s18, %s126_s18 }
  0xbc   :  { %p3845_p13 = scmp.ne.s32.totalorder %s126_s18, %s3844_s23  ;;  %p3850_p1 = scmp.lt.s32.totalorder %s3844_s23, %s3844_s23 }
  0xbe   :  { %p3851_p2 = por %p3850_p1, %p3849_p0 }
  0xc0   :  { %p3852_p3 = pnand %p3851_p2, %p3845_p13 }
  0xc2   :  { %3855 = shalt.err (!%p3852_p3)
}
  0xc3   :  { %131 = dma.hbm_to_vmem [thread:$0]  %s4416_s8, 16384, %s126_s18, [#allocation15], %s4015_s11, %s4015_s11, %s4016_s3  }
  0xc4   :  { %s4025_s5 = smov [#allocation19]   ;;  %s4026_s27 = smov [#allocation22]  }
  0xc5   :  { %s147_s0 = sshll.u32 %s4025_s5, 4  ;;  %s169_s24 = sshll.u32 %s4026_s27, 4  ;;  %s148_s0 = int_to_ptr.vmem [resolvable:$true] %s147_s0  ;;  %s170_s24 = int_to_ptr.vmem [resolvable:$true] %s169_s24 }
  0xc6   :  { %s3856_s9 = scalar_lea.hbm %s4418_s10, 2048 }
  0xc7   :  { %p3857_p4 = scmp.ne.s32.totalorder %s4418_s10, %s3856_s9  ;;  %p3860_p5 = scmp.lt.u32.totalorder %s3856_s9, %s4418_s10 }
  0xc9   :  { %p3862_p6 = pnand %p3860_p5, %p3857_p4 }
  0xcb   :  { %3865 = shalt.err (!%p3862_p6)
}
  0xcc   :  { %s3866_s8 = scalar_lea.vmem %s148_s0, 2048  ;;  %p3871_p8 = scmp.lt.s32.totalorder %s148_s0, %s148_s0 }
  0xcd   :  { %p3867_p7 = scmp.ne.s32.totalorder %s148_s0, %s3866_s8  ;;  %p3872_p9 = scmp.lt.s32.totalorder %s3866_s8, %s3866_s8 }
  0xcf   :  { %p3873_p10 = por %p3872_p9, %p3871_p8 }
  0xd1   :  { %p3874_p11 = pnand %p3873_p10, %p3867_p7 }
  0xd3   :  { %3877 = shalt.err (!%p3874_p11)
}
  0xd4   :  { %153 = dma.hbm_to_vmem [thread:$0]  %s4418_s10, 2048, %s148_s0, [#allocation18], %s4018_s29, %s4018_s29, %s4019_s30  }
  0xd5   :  { %s3878_s19 = scalar_lea.hbm %s4420_s12, 2048 }
  0xd6   :  { %p3879_p12 = scmp.ne.s32.totalorder %s4420_s12, %s3878_s19  ;;  %p3882_p13 = scmp.lt.u32.totalorder %s3878_s19, %s4420_s12 }
  0xd8   :  { %p3884_p0 = pnand %p3882_p13, %p3879_p12 }
  0xda   :  { %3887 = shalt.err (!%p3884_p0)
}
  0xdb   :  { %s3888_s5 = scalar_lea.vmem %s170_s24, 2048  ;;  %p3893_p2 = scmp.lt.s32.totalorder %s170_s24, %s170_s24 }
  0xdc   :  { %p3889_p1 = scmp.ne.s32.totalorder %s170_s24, %s3888_s5  ;;  %p3894_p3 = scmp.lt.s32.totalorder %s3888_s5, %s3888_s5 }
  0xde   :  { %p3895_p4 = por %p3894_p3, %p3893_p2 }
  0xe0   :  { %p3896_p5 = pnand %p3895_p4, %p3889_p1 }
  0xe2   :  { %3899 = shalt.err (!%p3896_p5)
}
  0xe3   :  { %175 = dma.hbm_to_vmem [thread:$0]  %s4420_s12, 2048, %s170_s24, [#allocation21], %s4021_s2, %s4021_s2, %s4022_s25  }
  0xe4   :  { %s4027_s30 = smov [#allocation23]   ;;  %s3900_s20 = scalar_lea.hbm %s4421_s13, 16 }
  0xe5   :  { %s182_s0 = sshll.u32 %s4027_s30, 4  ;;  %p3901_p6 = scmp.ne.s32.totalorder %s4421_s13, %s3900_s20  ;;  %s183_s0 = int_to_ptr.vmem [resolvable:$true] %s182_s0 }
  0xe6   :  { %p3904_p7 = scmp.lt.u32.totalorder %s3900_s20, %s4421_s13 }
  0xe8   :  { %p3906_p8 = pnand %p3904_p7, %p3901_p6 }
  0xea   :  { %3909 = shalt.err (!%p3906_p8)
}
  0xeb   :  { %s3910_s22 = scalar_lea.vmem %s183_s0, 16  ;;  %s3914_s12 = scalar_lea.vmem %s183_s0, 32 }
  0xec   :  { %p3911_p9 = scmp.ne.s32.totalorder %s183_s0, %s3910_s22  ;;  %p3915_p10 = scmp.lt.s32.totalorder %s183_s0, %s183_s0 }
  0xed   :  { %p3916_p11 = scmp.lt.s32.totalorder %s3914_s12, %s3910_s22 }
  0xef   :  { %p3917_p12 = por %p3916_p11, %p3915_p10 }
  0xf1   :  { %p3918_p13 = pnand %p3917_p12, %p3911_p9 }
  0xf3   :  { %3921 = shalt.err (!%p3918_p13)
}
  0xf4   :  { %185 = dma.hbm_to_vmem [thread:$0]  %s4421_s13, 16, %s183_s0, [#allocation24]  }
  0xf5   :  { %3988 = dma.done.wait [#allocation3], 1024  }
  0xf6   :  { %3989 = vsyncadd [#allocation3], 4294966272 }
  0xf7   :  { %3990 = dma.done.wait [#allocation6], 16512  }
  0xf8   :  { %3991 = vsyncadd [#allocation6], 4294950784 }
  0xf9   :  { %3992 = dma.done.wait [#allocation9], 2080  }
  0xfa   :  { %3993 = vsyncadd [#allocation9], 4294965216 }
  0xfb   :  { %3994 = dma.done.wait [#allocation12], 2064  }
  0xfc   :  { %3995 = vsyncadd [#allocation12], 4294965232 }
  0xfd   :  { %3996 = dma.done.wait [#allocation15], 16416  }
  0xfe   :  { %3997 = vsyncadd [#allocation15], 4294950880 }
  0xff   :  { %3998 = dma.done.wait [#allocation18], 2176  }
 0x100   :  { %3999 = vsyncadd [#allocation18], 4294965120 }
 0x101   :  { %4000 = dma.done.wait [#allocation21], 2080  }
 0x102   :  { %4001 = vsyncadd [#allocation21], 4294965216 }
 0x103   :  { %4002 = dma.done.wait [#allocation24], 16  }
 0x104   :  { %4003 = vsyncadd [#allocation24], 4294967280  ;;  %v3342_v0 = vld [vmem:[#allocation7 + $0x4] ss:$8 sps:$4 sm:$0xff]   ;;  %v3344_v1 = vld [vmem:[#allocation7] ss:$8 sps:$4 sm:$0xff]  }
 0x105   :  { %1057 = vmatprep.subr.bf16.mxu0 %v3342_v0  ;;  %v3345_v2 = vld [vmem:[#allocation7 + $0x14] ss:$8 sps:$4 sm:$0xff]   ;;  %v3347_v3 = vld [vmem:[#allocation7 + $0x10] ss:$8 sps:$4 sm:$0xff]   ;;  %v3348_v4 = vld [vmem:[#allocation7 + $0x24] ss:$8 sps:$4 sm:$0xff]  }
 0x106   :  { %1058 = vmatpush1.bf16.msra.mxu0 %v3344_v1  ;;  %v3350_v5 = vld [vmem:[#allocation7 + $0x20] ss:$8 sps:$4 sm:$0xff]   ;;  %v3351_v6 = vld [vmem:[#allocation7 + $0x34] ss:$8 sps:$4 sm:$0xff]   ;;  %v3353_v7 = vld [vmem:[#allocation7 + $0x30] ss:$8 sps:$4 sm:$0xff]  }
 0x107   :  { %1059 = vmatprep.subr.bf16.mxu0 %v3345_v2  ;;  %v3354_v8 = vld [vmem:[#allocation7 + $0x44] ss:$8 sps:$4 sm:$0xff]   ;;  %v3356_v9 = vld [vmem:[#allocation7 + $0x40] ss:$8 sps:$4 sm:$0xff]   ;;  %v3357_v10 = vld [vmem:[#allocation7 + $0x54] ss:$8 sps:$4 sm:$0xff]  }
 0x108   :  { %v3359_v11 = vld [vmem:[#allocation7 + $0x50] ss:$8 sps:$4 sm:$0xff]   ;;  %v3360_v12 = vld [vmem:[#allocation7 + $0x64] ss:$8 sps:$4 sm:$0xff]   ;;  %v3362_v16 = vld [vmem:[#allocation7 + $0x60] ss:$8 sps:$4 sm:$0xff]  }
 0x109   :  { %v229_v13 = vld [vmem:[#allocation2] sm:$0xff]  ;;  %v3366_v19 = vld [vmem:[#allocation7 + $0x84] ss:$8 sps:$4 sm:$0xff]   ;;  %v3368_v20 = vld [vmem:[#allocation7 + $0x80] ss:$8 sps:$4 sm:$0xff]   ;;  %s4029_s13 = smov [#allocation25]  }
 0x10a   :  { %1060 = vmatpush1.bf16.msra.mxu0 %v3347_v3  ;;  %v233_v14 = vld [vmem:[#allocation2 + $0x20] sm:$0xff]  ;;  %v3372_v23 = vld [vmem:[#allocation7 + $0xa4] ss:$8 sps:$4 sm:$0xff]   ;;  %v3374_v24 = vld [vmem:[#allocation7 + $0xa0] ss:$8 sps:$4 sm:$0xff]   ;;  %s2885_s24 = sshll.u32 %s4029_s13, 4  ;;  %s2886_s24 = int_to_ptr.vmem [resolvable:$true] %s2885_s24 }
 0x10b   :  { %1061 = vmatprep.subr.bf16.mxu0 %v3348_v4  ;;  %v2929_v15 = vcombine.high %v229_v13, %v233_v14  ;;  %v3363_v17 = vld [vmem:[#allocation7 + $0x74] ss:$8 sps:$4 sm:$0xff]   ;;  %v3365_v18 = vld [vmem:[#allocation7 + $0x70] ss:$8 sps:$4 sm:$0xff]   ;;  %v3378_v27 = vld [vmem:[#allocation7 + $0xc4] ss:$8 sps:$4 sm:$0xff]   ;;  %v2928_v38 = vcombine.low %v229_v13, %v233_v14  ;;  %p3927_p1 = scmp.lt.s32.totalorder %s2886_s24, %s2886_s24 }
 0x10c   :  { %v3369_v21 = vld [vmem:[#allocation7 + $0x94] ss:$8 sps:$4 sm:$0xff]   ;;  %v3371_v22 = vld [vmem:[#allocation7 + $0x90] ss:$8 sps:$4 sm:$0xff]   ;;  %v3380_v28 = vld [vmem:[#allocation7 + $0xc0] ss:$8 sps:$4 sm:$0xff]  }
 0x10d   :  { %1089 = vmatprep.mubr.bf16.mxu0 %v2929_v15  ;;  %v3375_v25 = vld [vmem:[#allocation7 + $0xb4] ss:$8 sps:$4 sm:$0xff]   ;;  %v3377_v26 = vld [vmem:[#allocation7 + $0xb0] ss:$8 sps:$4 sm:$0xff]   ;;  %v3384_v31 = vld [vmem:[#allocation7 + $0xe4] ss:$8 sps:$4 sm:$0xff]  }
 0x10e   :  { %1062 = vmatpush1.bf16.msra.mxu0 %v3350_v5  ;;  %v3381_v29 = vld [vmem:[#allocation7 + $0xd4] ss:$8 sps:$4 sm:$0xff]   ;;  %v3383_v30 = vld [vmem:[#allocation7 + $0xd0] ss:$8 sps:$4 sm:$0xff]   ;;  %v3386_v32 = vld [vmem:[#allocation7 + $0xe0] ss:$8 sps:$4 sm:$0xff]  }
 0x10f   :  { %1063 = vmatprep.subr.bf16.mxu0 %v3351_v6  ;;  %v3387_v33 = vld [vmem:[#allocation7 + $0xf4] ss:$8 sps:$4 sm:$0xff]   ;;  %v3389_v34 = vld [vmem:[#allocation7 + $0xf0] ss:$8 sps:$4 sm:$0xff]   ;;  %v3392_v35 = vld [vmem:[#allocation7 + $0x104] ss:$8 sps:$4 sm:$0xff]  }
 0x110   :  { %v4306_v36 = vld [vmem:[#allocation2 + $0x8] sm:$0xff]  ;;  %v3395_v41 = vld [vmem:[#allocation7 + $0x114] ss:$8 sps:$4 sm:$0xff]   ;;  %v3393_v42 = vld [vmem:[#allocation7 + $0x110] ss:$8 sps:$4 sm:$0xff]   ;;  %s3922_s8 = scalar_lea.vmem %s2886_s24, 128 }
 0x111   :  { %v4308_v37 = vld [vmem:[#allocation2 + $0x28] sm:$0xff]  ;;  %v3401_v45 = vld [vmem:[#allocation7 + $0x134] ss:$8 sps:$4 sm:$0xff]   ;;  %v3399_v46 = vld [vmem:[#allocation7 + $0x130] ss:$8 sps:$4 sm:$0xff]   ;;  %p3923_p0 = scmp.ne.s32.totalorder %s2886_s24, %s3922_s8  ;;  %p3928_p2 = scmp.lt.s32.totalorder %s3922_s8, %s3922_s8 }
 0x112   :  { %1064 = vmatpush1.bf16.msra.mxu0 %v3353_v7  ;;  %v3390_v39 = vld [vmem:[#allocation7 + $0x100] ss:$8 sps:$4 sm:$0xff]   ;;  %v2931_v40 = vcombine.high %v4306_v36, %v4308_v37  ;;  %v3398_v43 = vld [vmem:[#allocation7 + $0x124] ss:$8 sps:$4 sm:$0xff]   ;;  %v3407_v49 = vld [vmem:[#allocation7 + $0x154] ss:$8 sps:$4 sm:$0xff]  }
 0x113   :  { %1065 = vmatprep.subr.bf16.mxu0 %v3354_v8  ;;  %v3396_v44 = vld [vmem:[#allocation7 + $0x120] ss:$8 sps:$4 sm:$0xff]   ;;  %v3404_v47 = vld [vmem:[#allocation7 + $0x144] ss:$8 sps:$4 sm:$0xff]   ;;  %v3405_v50 = vld [vmem:[#allocation7 + $0x150] ss:$8 sps:$4 sm:$0xff]   ;;  %p3929_p3 = por %p3928_p2, %p3927_p1 }
 0x114   :  { %v3402_v48 = vld [vmem:[#allocation7 + $0x140] ss:$8 sps:$4 sm:$0xff]   ;;  %v3410_v51 = vld [vmem:[#allocation7 + $0x164] ss:$8 sps:$4 sm:$0xff]   ;;  %v3413_v53 = vld [vmem:[#allocation7 + $0x174] ss:$8 sps:$4 sm:$0xff]  }
 0x115   :  { %v3408_v52 = vld [vmem:[#allocation7 + $0x160] ss:$8 sps:$4 sm:$0xff]   ;;  %v3411_v54 = vld [vmem:[#allocation7 + $0x170] ss:$8 sps:$4 sm:$0xff]   ;;  %v3416_v55 = vld [vmem:[#allocation7 + $0x184] ss:$8 sps:$4 sm:$0xff]   ;;  %p3930_p4 = pnand %p3929_p3, %p3923_p0 }
 0x116   :  { %1066 = vmatpush1.bf16.msra.mxu0 %v3356_v9  ;;  %v3414_v56 = vld [vmem:[#allocation7 + $0x180] ss:$8 sps:$4 sm:$0xff]   ;;  %v3419_v57 = vld [vmem:[#allocation7 + $0x194] ss:$8 sps:$4 sm:$0xff]   ;;  %v3417_v58 = vld [vmem:[#allocation7 + $0x190] ss:$8 sps:$4 sm:$0xff]  }
 0x117   :  { %1067 = vmatprep.subr.bf16.mxu0 %v3357_v10  ;;  %v3422_v59 = vld [vmem:[#allocation7 + $0x1a4] ss:$8 sps:$4 sm:$0xff]   ;;  %v3420_v60 = vld [vmem:[#allocation7 + $0x1a0] ss:$8 sps:$4 sm:$0xff]   ;;  %v3425_v61 = vld [vmem:[#allocation7 + $0x1b4] ss:$8 sps:$4 sm:$0xff]   ;;  %v2930_v10 = vcombine.low %v4306_v36, %v4308_v37 }
 0x118   :  { %v3423_v62 = vld [vmem:[#allocation7 + $0x1b0] ss:$8 sps:$4 sm:$0xff]   ;;  %v3428_v63 = vld [vmem:[#allocation7 + $0x1c4] ss:$8 sps:$4 sm:$0xff]   ;;  %v3426_v0 = vld [vmem:[#allocation7 + $0x1c0] ss:$8 sps:$4 sm:$0xff]  }
 0x119   :  { %v3431_v1 = vld [vmem:[#allocation7 + $0x1d4] ss:$8 sps:$4 sm:$0xff]   ;;  %v3429_v2 = vld [vmem:[#allocation7 + $0x1d0] ss:$8 sps:$4 sm:$0xff]   ;;  %v3434_v3 = vld [vmem:[#allocation7 + $0x1e4] ss:$8 sps:$4 sm:$0xff]  }
 0x11a   :  { %1068 = vmatpush1.bf16.msra.mxu0 %v3359_v11  ;;  %v3432_v4 = vld [vmem:[#allocation7 + $0x1e0] ss:$8 sps:$4 sm:$0xff]   ;;  %v3437_v5 = vld [vmem:[#allocation7 + $0x1f4] ss:$8 sps:$4 sm:$0xff]   ;;  %v3435_v6 = vld [vmem:[#allocation7 + $0x1f0] ss:$8 sps:$4 sm:$0xff]  }
 0x11b   :  { %1069 = vmatprep.subr.bf16.mxu0 %v3360_v12  ;;  %v3440_v7 = vld [vmem:[#allocation7 + $0x204] ss:$8 sps:$4 sm:$0xff]   ;;  %v3438_v11 = vld [vmem:[#allocation7 + $0x200] ss:$8 sps:$4 sm:$0xff]   ;;  %v3443_v13 = vld [vmem:[#allocation7 + $0x214] ss:$8 sps:$4 sm:$0xff]  }
 0x11c   :  { %v4312_v8 = vld [vmem:[#allocation2 + $0x10] sm:$0xff]  ;;  %v3461_v36 = vld [vmem:[#allocation7 + $0x274] ss:$8 sps:$4 sm:$0xff]   ;;  %v3459_v37 = vld [vmem:[#allocation7 + $0x270] ss:$8 sps:$4 sm:$0xff]  }
 0x11d   :  { %v4314_v9 = vld [vmem:[#allocation2 + $0x30] sm:$0xff] }
 0x11e   :  { %1070 = vmatpush1.bf16.msra.mxu0 %v3362_v16  ;;  %v2933_v12 = vcombine.high %v4312_v8, %v4314_v9  ;;  %v3534_v14 = vld [vmem:[#allocation10 + $0x40] sm:$0xff]   ;;  %v3536_v16 = vld [vmem:[#allocation10 + $0x48] sm:$0xff]  }
 0x11f   :  { %1071 = vmatprep.subr.bf16.mxu0 %v3363_v17  ;;  %v3535_v15 = vld [vmem:[#allocation10] sm:$0xff]   ;;  %v3441_v17 = vld [vmem:[#allocation7 + $0x210] ss:$8 sps:$4 sm:$0xff]   ;;  %3258 = vmatprep.subr.bf16.mxu1 %v3534_v14 }
 0x120   :  { %3259 = vmatpush3.bf16.msra.mxu1 %v3535_v15  ;;  %v3518_v14 = vld [vmem:[#allocation7 + $0x3a4] ss:$8 sps:$4 sm:$0xff]   ;;  %v3516_v15 = vld [vmem:[#allocation7 + $0x3a0] ss:$8 sps:$4 sm:$0xff]  }
 0x121   :  { %3260 = vmatprep.subr.bf16.mxu1 %v3536_v16  ;;  %v3521_v16 = vld [vmem:[#allocation7 + $0x3b4] ss:$8 sps:$4 sm:$0xff]  }
 0x122   :  { %1072 = vmatpush1.bf16.msra.mxu0 %v3365_v18  ;;  %v3446_v18 = vld [vmem:[#allocation7 + $0x224] ss:$8 sps:$4 sm:$0xff]  }
 0x123   :  { %1073 = vmatprep.subr.bf16.mxu0 %v3366_v19  ;;  %v3537_v19 = vld [vmem:[#allocation10 + $0x8] sm:$0xff]  }
 0x124   :  { %3261 = vmatpush3.bf16.msra.mxu1 %v3537_v19  ;;  %v3522_v19 = vld [vmem:[#allocation7 + $0x3c0] ss:$8 sps:$4 sm:$0xff]  }
 0x126   :  { %1074 = vmatpush1.bf16.msra.mxu0 %v3368_v20  ;;  %v3538_v20 = vld [vmem:[#allocation10 + $0x50] sm:$0xff]  }
 0x127   :  { %1075 = vmatprep.subr.bf16.mxu0 %v3369_v21  ;;  %v3444_v21 = vld [vmem:[#allocation7 + $0x220] ss:$8 sps:$4 sm:$0xff]   ;;  %3262 = vmatprep.subr.bf16.mxu1 %v3538_v20  ;;  %v3527_v20 = vld [vmem:[#allocation7 + $0x3d4] ss:$8 sps:$4 sm:$0xff]  }
 0x12a   :  { %1076 = vmatpush1.bf16.msra.mxu0 %v3371_v22  ;;  %v3449_v22 = vld [vmem:[#allocation7 + $0x234] ss:$8 sps:$4 sm:$0xff]  }
 0x12b   :  { %1077 = vmatprep.subr.bf16.mxu0 %v3372_v23  ;;  %v3539_v23 = vld [vmem:[#allocation10 + $0x10] sm:$0xff]  }
 0x12c   :  { %3263 = vmatpush3.bf16.msra.mxu1 %v3539_v23  ;;  %v3528_v23 = vld [vmem:[#allocation7 + $0x3e0] ss:$8 sps:$4 sm:$0xff]  }
 0x12e   :  { %1078 = vmatpush1.bf16.msra.mxu0 %v3374_v24  ;;  %v3540_v24 = vld [vmem:[#allocation10 + $0x58] sm:$0xff]  }
 0x12f   :  { %1079 = vmatprep.subr.bf16.mxu0 %v3375_v25  ;;  %v3447_v25 = vld [vmem:[#allocation7 + $0x230] ss:$8 sps:$4 sm:$0xff]   ;;  %3264 = vmatprep.subr.bf16.mxu1 %v3540_v24  ;;  %v3533_v24 = vld [vmem:[#allocation7 + $0x3f4] ss:$8 sps:$4 sm:$0xff]  }
 0x132   :  { %1080 = vmatpush1.bf16.msra.mxu0 %v3377_v26  ;;  %v3452_v26 = vld [vmem:[#allocation7 + $0x244] ss:$8 sps:$4 sm:$0xff]  }
 0x133   :  { %1081 = vmatprep.subr.bf16.mxu0 %v3378_v27  ;;  %v3541_v27 = vld [vmem:[#allocation10 + $0x18] sm:$0xff]  }
 0x134   :  { %3265 = vmatpush3.bf16.msra.mxu1 %v3541_v27  ;;  %v3545_v27 = vld [vmem:[#allocation10 + $0x28] sm:$0xff]  }
 0x136   :  { %1082 = vmatpush1.bf16.msra.mxu0 %v3380_v28  ;;  %v3542_v28 = vld [vmem:[#allocation10 + $0x60] sm:$0xff]  }
 0x137   :  { %1083 = vmatprep.subr.bf16.mxu0 %v3381_v29  ;;  %v3450_v29 = vld [vmem:[#allocation7 + $0x240] ss:$8 sps:$4 sm:$0xff]   ;;  %3266 = vmatprep.subr.bf16.mxu1 %v3542_v28  ;;  %v3546_v28 = vld [vmem:[#allocation10 + $0x70] sm:$0xff]  }
 0x13a   :  { %1084 = vmatpush1.bf16.msra.mxu0 %v3383_v30  ;;  %v3455_v30 = vld [vmem:[#allocation7 + $0x254] ss:$8 sps:$4 sm:$0xff]  }
 0x13b   :  { %1085 = vmatprep.subr.bf16.mxu0 %v3384_v31  ;;  %v3543_v31 = vld [vmem:[#allocation10 + $0x20] sm:$0xff]  }
 0x13c   :  { %3267 = vmatpush3.bf16.msra.mxu1 %v3543_v31  ;;  %v3549_v31 = vld [vmem:[#allocation10 + $0x38] sm:$0xff]  }
 0x13e   :  { %1086 = vmatpush1.bf16.msra.mxu0 %v3386_v32  ;;  %v3544_v32 = vld [vmem:[#allocation10 + $0x68] sm:$0xff]  }
 0x13f   :  { %1087 = vmatprep.subr.bf16.mxu0 %v3387_v33  ;;  %v3453_v33 = vld [vmem:[#allocation7 + $0x250] ss:$8 sps:$4 sm:$0xff]   ;;  %3268 = vmatprep.subr.bf16.mxu1 %v3544_v32 }
 0x140   :  { %3269 = vmatpush3.bf16.msra.mxu1 %v3545_v27  ;;  %v3552_v32 = vld [vmem:[#allocation19 + $0x4] ss:$8 sps:$4 sm:$0xff]  }
 0x141   :  { %3270 = vmatprep.subr.bf16.mxu1 %v3546_v28  ;;  %v3585_v27 = vld [vmem:[#allocation22 + $0x28] sm:$0xff]   ;;  %v3586_v28 = vld [vmem:[#allocation22 + $0x70] sm:$0xff]  }
 0x142   :  { %1088 = vmatpush1.bf16.msra.mxu0 %v3389_v34  ;;  %v3458_v34 = vld [vmem:[#allocation7 + $0x264] ss:$8 sps:$4 sm:$0xff]  }
 0x143   :  { %1100 = vmatprep.subr.bf16.mxu0 %v3392_v35  ;;  %v3456_v35 = vld [vmem:[#allocation7 + $0x260] ss:$8 sps:$4 sm:$0xff]  }
 0x145   :  { %1090 = vmatmul.mubr.bf16.vlgmr.msra.gmra.mrb[0].mxu0 %v2928_v38  ;;  %v3464_v38 = vld [vmem:[#allocation7 + $0x284] ss:$8 sps:$4 sm:$0xff]  }
 0x146   :  { %1101 = vmatpush1.bf16.msra.mxu0 %v3390_v39  ;;  %1132 = vmatprep.mubr.bf16.mxu0 %v2931_v40  ;;  %v3462_v39 = vld [vmem:[#allocation7 + $0x280] ss:$8 sps:$4 sm:$0xff]   ;;  %v3467_v40 = vld [vmem:[#allocation7 + $0x294] ss:$8 sps:$4 sm:$0xff]  }
 0x147   :  { %1102 = vmatprep.subr.bf16.mxu0 %v3395_v41  ;;  %v3465_v41 = vld [vmem:[#allocation7 + $0x290] ss:$8 sps:$4 sm:$0xff]  }
 0x14a   :  { %1103 = vmatpush1.bf16.msra.mxu0 %v3393_v42  ;;  %v3470_v42 = vld [vmem:[#allocation7 + $0x2a4] ss:$8 sps:$4 sm:$0xff]  }
 0x14b   :  { %1104 = vmatprep.subr.bf16.mxu0 %v3398_v43  ;;  %v3468_v43 = vld [vmem:[#allocation7 + $0x2a0] ss:$8 sps:$4 sm:$0xff]  }
 0x14e   :  { %1105 = vmatpush1.bf16.msra.mxu0 %v3396_v44  ;;  %v3473_v44 = vld [vmem:[#allocation7 + $0x2b4] ss:$8 sps:$4 sm:$0xff]  }
 0x14f   :  { %1106 = vmatprep.subr.bf16.mxu0 %v3401_v45  ;;  %v3471_v45 = vld [vmem:[#allocation7 + $0x2b0] ss:$8 sps:$4 sm:$0xff]  }
 0x152   :  { %1107 = vmatpush1.bf16.msra.mxu0 %v3399_v46  ;;  %v3476_v46 = vld [vmem:[#allocation7 + $0x2c4] ss:$8 sps:$4 sm:$0xff]  }
 0x153   :  { %1108 = vmatprep.subr.bf16.mxu0 %v3404_v47  ;;  %v3474_v47 = vld [vmem:[#allocation7 + $0x2c0] ss:$8 sps:$4 sm:$0xff]  }
 0x156   :  { %1109 = vmatpush1.bf16.msra.mxu0 %v3402_v48  ;;  %v3479_v48 = vld [vmem:[#allocation7 + $0x2d4] ss:$8 sps:$4 sm:$0xff]  }
 0x157   :  { %1110 = vmatprep.subr.bf16.mxu0 %v3407_v49  ;;  %v3477_v49 = vld [vmem:[#allocation7 + $0x2d0] ss:$8 sps:$4 sm:$0xff]  }
 0x15a   :  { %1111 = vmatpush1.bf16.msra.mxu0 %v3405_v50  ;;  %v3482_v50 = vld [vmem:[#allocation7 + $0x2e4] ss:$8 sps:$4 sm:$0xff]  }
 0x15b   :  { %1112 = vmatprep.subr.bf16.mxu0 %v3410_v51  ;;  %v3480_v51 = vld [vmem:[#allocation7 + $0x2e0] ss:$8 sps:$4 sm:$0xff]  }
 0x15e   :  { %1113 = vmatpush1.bf16.msra.mxu0 %v3408_v52  ;;  %v3485_v52 = vld [vmem:[#allocation7 + $0x2f4] ss:$8 sps:$4 sm:$0xff]  }
 0x15f   :  { %1114 = vmatprep.subr.bf16.mxu0 %v3413_v53  ;;  %v3483_v53 = vld [vmem:[#allocation7 + $0x2f0] ss:$8 sps:$4 sm:$0xff]  }
 0x162   :  { %1115 = vmatpush1.bf16.msra.mxu0 %v3411_v54  ;;  %v3488_v54 = vld [vmem:[#allocation7 + $0x304] ss:$8 sps:$4 sm:$0xff]  }
 0x163   :  { %1116 = vmatprep.subr.bf16.mxu0 %v3416_v55  ;;  %v4320_v55 = vld [vmem:[#allocation2 + $0x18] sm:$0xff] }
 0x166   :  { %1117 = vmatpush1.bf16.msra.mxu0 %v3414_v56  ;;  %v4322_v56 = vld [vmem:[#allocation2 + $0x38] sm:$0xff] }
 0x167   :  { %1118 = vmatprep.subr.bf16.mxu0 %v3419_v57  ;;  %v2932_v57 = vcombine.low %v4312_v8, %v4314_v9  ;;  %v3509_v8 = vld [vmem:[#allocation7 + $0x374] ss:$8 sps:$4 sm:$0xff]   ;;  %v3507_v9 = vld [vmem:[#allocation7 + $0x370] ss:$8 sps:$4 sm:$0xff]  }
 0x16a   :  { %1119 = vmatpush1.bf16.msra.mxu0 %v3417_v58  ;;  %v3486_v58 = vld [vmem:[#allocation7 + $0x300] ss:$8 sps:$4 sm:$0xff]  }
 0x16b   :  { %1120 = vmatprep.subr.bf16.mxu0 %v3422_v59  ;;  %v2935_v59 = vcombine.high %v4320_v55, %v4322_v56 }
 0x16e   :  { %1121 = vmatpush1.bf16.msra.mxu0 %v3420_v60  ;;  %v3491_v60 = vld [vmem:[#allocation7 + $0x314] ss:$8 sps:$4 sm:$0xff]  }
 0x16f   :  { %1122 = vmatprep.subr.bf16.mxu0 %v3425_v61  ;;  %v3489_v61 = vld [vmem:[#allocation7 + $0x310] ss:$8 sps:$4 sm:$0xff]  }
 0x172   :  { %1123 = vmatpush1.bf16.msra.mxu0 %v3423_v62  ;;  %v3494_v62 = vld [vmem:[#allocation7 + $0x324] ss:$8 sps:$4 sm:$0xff]  }
 0x173   :  { %1124 = vmatprep.subr.bf16.mxu0 %v3428_v63  ;;  %v3492_v63 = vld [vmem:[#allocation7 + $0x320] ss:$8 sps:$4 sm:$0xff]  }
 0x176   :  { %1125 = vmatpush1.bf16.msra.mxu0 %v3426_v0  ;;  %v3497_v0 = vld [vmem:[#allocation7 + $0x334] ss:$8 sps:$4 sm:$0xff]  }
 0x177   :  { %1126 = vmatprep.subr.bf16.mxu0 %v3431_v1  ;;  %v3495_v1 = vld [vmem:[#allocation7 + $0x330] ss:$8 sps:$4 sm:$0xff]  }
 0x17a   :  { %1127 = vmatpush1.bf16.msra.mxu0 %v3429_v2  ;;  %v3500_v2 = vld [vmem:[#allocation7 + $0x344] ss:$8 sps:$4 sm:$0xff]  }
 0x17b   :  { %1128 = vmatprep.subr.bf16.mxu0 %v3434_v3  ;;  %v3498_v3 = vld [vmem:[#allocation7 + $0x340] ss:$8 sps:$4 sm:$0xff]  }
 0x17e   :  { %1129 = vmatpush1.bf16.msra.mxu0 %v3432_v4  ;;  %v3503_v4 = vld [vmem:[#allocation7 + $0x354] ss:$8 sps:$4 sm:$0xff]  }
 0x17f   :  { %1130 = vmatprep.subr.bf16.mxu0 %v3437_v5  ;;  %v3501_v5 = vld [vmem:[#allocation7 + $0x350] ss:$8 sps:$4 sm:$0xff]  }
 0x182   :  { %1131 = vmatpush1.bf16.msra.mxu0 %v3435_v6  ;;  %v3506_v6 = vld [vmem:[#allocation7 + $0x364] ss:$8 sps:$4 sm:$0xff]  }
 0x183   :  { %1143 = vmatprep.subr.bf16.mxu0 %v3440_v7  ;;  %v3504_v7 = vld [vmem:[#allocation7 + $0x360] ss:$8 sps:$4 sm:$0xff]  }
 0x185   :  { %1133 = vmatmul.mubr.bf16.vlgmr.msra.gmra.mrb[0].mxu0 %v2930_v10  ;;  %v3512_v10 = vld [vmem:[#allocation7 + $0x384] ss:$8 sps:$4 sm:$0xff]  }
 0x186   :  { %1144 = vmatpush1.bf16.msra.mxu0 %v3438_v11  ;;  %1175 = vmatprep.mubr.bf16.mxu0 %v2933_v12  ;;  %v3510_v11 = vld [vmem:[#allocation7 + $0x380] ss:$8 sps:$4 sm:$0xff]   ;;  %v3515_v12 = vld [vmem:[#allocation7 + $0x394] ss:$8 sps:$4 sm:$0xff]  }
 0x187   :  { %1145 = vmatprep.subr.bf16.mxu0 %v3443_v13  ;;  %v3513_v13 = vld [vmem:[#allocation7 + $0x390] ss:$8 sps:$4 sm:$0xff]  }
 0x18a   :  { %1146 = vmatpush1.bf16.msra.mxu0 %v3441_v17  ;;  %v3519_v17 = vld [vmem:[#allocation7 + $0x3b0] ss:$8 sps:$4 sm:$0xff]  }
 0x18b   :  { %1147 = vmatprep.subr.bf16.mxu0 %v3446_v18  ;;  %v3524_v18 = vld [vmem:[#allocation7 + $0x3c4] ss:$8 sps:$4 sm:$0xff]  }
 0x18e   :  { %1148 = vmatpush1.bf16.msra.mxu0 %v3444_v21  ;;  %v3525_v21 = vld [vmem:[#allocation7 + $0x3d0] ss:$8 sps:$4 sm:$0xff]  }
 0x18f   :  { %1149 = vmatprep.subr.bf16.mxu0 %v3449_v22  ;;  %v3530_v22 = vld [vmem:[#allocation7 + $0x3e4] ss:$8 sps:$4 sm:$0xff]  }
 0x192   :  { %1150 = vmatpush1.bf16.msra.mxu0 %v3447_v25  ;;  %v3531_v25 = vld [vmem:[#allocation7 + $0x3f0] ss:$8 sps:$4 sm:$0xff]  }
 0x193   :  { %1151 = vmatprep.subr.bf16.mxu0 %v3452_v26  ;;  %v2934_v26 = vcombine.low %v4320_v55, %v4322_v56  ;;  %v3555_v55 = vld [vmem:[#allocation19 + $0x14] ss:$8 sps:$4 sm:$0xff]   ;;  %v3553_v56 = vld [vmem:[#allocation19 + $0x10] ss:$8 sps:$4 sm:$0xff]  }
 0x196   :  { %1152 = vmatpush1.bf16.msra.mxu0 %v3450_v29  ;;  %v3547_v29 = vld [vmem:[#allocation10 + $0x30] sm:$0xff]  }
 0x197   :  { %1153 = vmatprep.subr.bf16.mxu0 %v3455_v30  ;;  %3271 = vmatpush3.bf16.msra.mxu1 %v3547_v29  ;;  %v3548_v30 = vld [vmem:[#allocation10 + $0x78] sm:$0xff]  }
 0x198   :  { %3272 = vmatprep.subr.bf16.mxu1 %v3548_v30  ;;  %v3587_v29 = vld [vmem:[#allocation22 + $0x30] sm:$0xff]   ;;  %v3588_v30 = vld [vmem:[#allocation22 + $0x78] sm:$0xff]  }
 0x19a   :  { %1154 = vmatpush1.bf16.msra.mxu0 %v3453_v33  ;;  %v367_v33 = vlaneseq }
 0x19b   :  { %1155 = vmatprep.subr.bf16.mxu0 %v3458_v34  ;;  %3273 = vmatpush3.bf16.msra.mxu1 %v3549_v31  ;;  %v3589_v31 = vld [vmem:[#allocation22 + $0x38] sm:$0xff]  }
 0x19c   :  { %1522 = vmatprep.subr.bf16.mxu1 %v3552_v32  ;;  %v4330_v34 = vshrl.u32 %v367_v33, 7  ;;  %v3592_v32 = vld [vmem:[#allocation13 + $0x4] ss:$8 sps:$4 sm:$0xff]   ;;  %v1899_v33 = vld [vmem:[#allocation16 + $0x10] sm:$0xff] }
 0x19e   :  { %1156 = vmatpush1.bf16.msra.mxu0 %v3456_v35  ;;  %v4333_v35 = vsub.s32 0, %v4330_v34 }
 0x19f   :  { %1157 = vmatprep.subr.bf16.mxu0 %v3461_v36  ;;  %v365_v36 = vld [vmem:[#allocation8] sm:$0x3] }
 0x1a2   :  { %1158 = vmatpush1.bf16.msra.mxu0 %v3459_v37  ;;  %v4336_v37 = vsub.s32 1, %v4330_v34 }
 0x1a3   :  { %1159 = vmatprep.subr.bf16.mxu0 %v3464_v38  ;;  %v370_v38 = vrot.slane %v365_v36, %v4333_v35 }
 0x1a6   :  { %1160 = vmatpush1.bf16.msra.mxu0 %v3462_v39  ;;  %v374_v39 = vrot.slane %v365_v36, %v4336_v37  ;;  %v1903_v36 = vld [vmem:[#allocation16 + $0x30] sm:$0xff] }
 0x1a7   :  { %1161 = vmatprep.subr.bf16.mxu0 %v3467_v40 }
 0x1aa   :  { %1162 = vmatpush1.bf16.msra.mxu0 %v3465_v41 }
 0x1ab   :  { %1163 = vmatprep.subr.bf16.mxu0 %v3470_v42 }
 0x1ae   :  { %1164 = vmatpush1.bf16.msra.mxu0 %v3468_v43 }
 0x1af   :  { %1165 = vmatprep.subr.bf16.mxu0 %v3473_v44 }
 0x1b2   :  { %1166 = vmatpush1.bf16.msra.mxu0 %v3471_v45 }
 0x1b3   :  { %1167 = vmatprep.subr.bf16.mxu0 %v3476_v46 }
 0x1b6   :  { %1168 = vmatpush1.bf16.msra.mxu0 %v3474_v47 }
 0x1b7   :  { %1169 = vmatprep.subr.bf16.mxu0 %v3479_v48 }
 0x1ba   :  { %1170 = vmatpush1.bf16.msra.mxu0 %v3477_v49 }
 0x1bb   :  { %1171 = vmatprep.subr.bf16.mxu0 %v3482_v50 }
 0x1be   :  { %1172 = vmatpush1.bf16.msra.mxu0 %v3480_v51 }
 0x1bf   :  { %1173 = vmatprep.subr.bf16.mxu0 %v3485_v52 }
 0x1c2   :  { %1174 = vmatpush1.bf16.msra.mxu0 %v3483_v53 }
 0x1c3   :  { %1186 = vmatprep.subr.bf16.mxu0 %v3488_v54  ;;  %v3550_v54 = vld [vmem:[#allocation19] ss:$8 sps:$4 sm:$0xff]  }
 0x1c5   :  { %1176 = vmatmul.mubr.bf16.vlgmr.msra.gmra.mrb[0].mxu0 %v2932_v57  ;;  %v3558_v57 = vld [vmem:[#allocation19 + $0x24] ss:$8 sps:$4 sm:$0xff]  }
 0x1c6   :  { %1187 = vmatpush1.bf16.msra.mxu0 %v3486_v58  ;;  %1218 = vmatprep.mubr.bf16.mxu0 %v2935_v59  ;;  %v3556_v58 = vld [vmem:[#allocation19 + $0x20] ss:$8 sps:$4 sm:$0xff]   ;;  %v3561_v59 = vld [vmem:[#allocation19 + $0x34] ss:$8 sps:$4 sm:$0xff]  }
 0x1c7   :  { %1188 = vmatprep.subr.bf16.mxu0 %v3491_v60  ;;  %v3559_v60 = vld [vmem:[#allocation19 + $0x30] ss:$8 sps:$4 sm:$0xff]  }
 0x1ca   :  { %1189 = vmatpush1.bf16.msra.mxu0 %v3489_v61  ;;  %v3564_v61 = vld [vmem:[#allocation19 + $0x44] ss:$8 sps:$4 sm:$0xff]  }
 0x1cb   :  { %1190 = vmatprep.subr.bf16.mxu0 %v3494_v62  ;;  %v3562_v62 = vld [vmem:[#allocation19 + $0x40] ss:$8 sps:$4 sm:$0xff]  }
 0x1ce   :  { %1191 = vmatpush1.bf16.msra.mxu0 %v3492_v63  ;;  %v3567_v63 = vld [vmem:[#allocation19 + $0x54] ss:$8 sps:$4 sm:$0xff]  }
 0x1cf   :  { %1192 = vmatprep.subr.bf16.mxu0 %v3497_v0  ;;  %v3565_v0 = vld [vmem:[#allocation19 + $0x50] ss:$8 sps:$4 sm:$0xff]  }
 0x1d2   :  { %1193 = vmatpush1.bf16.msra.mxu0 %v3495_v1  ;;  %v3570_v1 = vld [vmem:[#allocation19 + $0x64] ss:$8 sps:$4 sm:$0xff]  }
 0x1d3   :  { %1194 = vmatprep.subr.bf16.mxu0 %v3500_v2  ;;  %v3568_v2 = vld [vmem:[#allocation19 + $0x60] ss:$8 sps:$4 sm:$0xff]  }
 0x1d6   :  { %1195 = vmatpush1.bf16.msra.mxu0 %v3498_v3  ;;  %v3573_v3 = vld [vmem:[#allocation19 + $0x74] ss:$8 sps:$4 sm:$0xff]  }
 0x1d7   :  { %1196 = vmatprep.subr.bf16.mxu0 %v3503_v4  ;;  %v3571_v4 = vld [vmem:[#allocation19 + $0x70] ss:$8 sps:$4 sm:$0xff]  }
 0x1da   :  { %1197 = vmatpush1.bf16.msra.mxu0 %v3501_v5  ;;  %v4028_v5 = vmov 0  }
 0x1db   :  { %1198 = vmatprep.subr.bf16.mxu0 %v3506_v6  ;;  %v3574_v6 = vld [vmem:[#allocation22 + $0x40] sm:$0xff]  }
 0x1de   :  { %1199 = vmatpush1.bf16.msra.mxu0 %v3504_v7 }
 0x1df   :  { %1200 = vmatprep.subr.bf16.mxu0 %v3509_v8  ;;  %v3064_v8 = vld [vmem:[#allocation11] ss:$0 sm:$0xff] }
 0x1e2   :  { %1201 = vmatpush1.bf16.msra.mxu0 %v3507_v9 }
 0x1e3   :  { %1202 = vmatprep.subr.bf16.mxu0 %v3512_v10 }
 0x1e6   :  { %1203 = vmatpush1.bf16.msra.mxu0 %v3510_v11 }
 0x1e7   :  { %1204 = vmatprep.subr.bf16.mxu0 %v3515_v12  ;;  %v1411_v12 = vld [vmem:[#allocation5] sm:$0xff] }
 0x1ea   :  { %1205 = vmatpush1.bf16.msra.mxu0 %v3513_v13 }
 0x1eb   :  { %1206 = vmatprep.subr.bf16.mxu0 %v3518_v14 }
 0x1ee   :  { %1207 = vmatpush1.bf16.msra.mxu0 %v3516_v15 }
 0x1ef   :  { %1208 = vmatprep.subr.bf16.mxu0 %v3521_v16  ;;  %v3575_v16 = vld [vmem:[#allocation22] sm:$0xff]  }
 0x1f2   :  { %1209 = vmatpush1.bf16.msra.mxu0 %v3519_v17 }
 0x1f3   :  { %1210 = vmatprep.subr.bf16.mxu0 %v3524_v18  ;;  %v3576_v18 = vld [vmem:[#allocation22 + $0x48] sm:$0xff]  }
 0x1f6   :  { %1211 = vmatpush1.bf16.msra.mxu0 %v3522_v19  ;;  %v3577_v19 = vld [vmem:[#allocation22 + $0x8] sm:$0xff]  }
 0x1f7   :  { %1212 = vmatprep.subr.bf16.mxu0 %v3527_v20  ;;  %v3578_v20 = vld [vmem:[#allocation22 + $0x50] sm:$0xff]  }
 0x1fa   :  { %1213 = vmatpush1.bf16.msra.mxu0 %v3525_v21  ;;  %v3579_v21 = vld [vmem:[#allocation22 + $0x10] sm:$0xff]  }
 0x1fb   :  { %1214 = vmatprep.subr.bf16.mxu0 %v3530_v22  ;;  %v3580_v22 = vld [vmem:[#allocation22 + $0x58] sm:$0xff]  }
 0x1fe   :  { %1215 = vmatpush1.bf16.msra.mxu0 %v3528_v23  ;;  %v3581_v23 = vld [vmem:[#allocation22 + $0x18] sm:$0xff]  }
 0x1ff   :  { %1216 = vmatprep.subr.bf16.mxu0 %v3533_v24  ;;  %v3582_v24 = vld [vmem:[#allocation22 + $0x60] sm:$0xff]  }
 0x202   :  { %1217 = vmatpush1.bf16.msra.mxu0 %v3531_v25  ;;  %v3583_v25 = vld [vmem:[#allocation22 + $0x20] sm:$0xff]  }
 0x205   :  { %1219 = vmatmul.mubr.bf16.vlgmr.msra.gmra.mrb[0].mxu0 %v2934_v26  ;;  %v3584_v26 = vld [vmem:[#allocation22 + $0x68] sm:$0xff]  }
 0x2d8   :  { %v1220_v40 = vpop.f32.mrb[0].mxu0 }
 0x2d9   :  { %v3302_v41 = vadd.f32 %v1220_v40, %v370_v38  ;;  %v1222_v42 = vpop.f32.mrb[1].mxu0  ;;  %v1907_v40 = vld [vmem:[#allocation16 + $0x50] sm:$0xff] }
 0x2da   :  { %v3303_v43 = vadd.f32 %v1222_v42, %v374_v39  ;;  %v1224_v44 = vpop.f32.mrb[2].mxu0 }
 0x2db   :  { %v3304_v45 = vadd.f32 %v1224_v44, %v370_v38  ;;  %v1226_v46 = vpop.f32.mrb[3].mxu0  ;;  %v1229_v48 = vmax.f32 %v3302_v41, 0.0  ;;  %v3134_v38 = vcombine.low %v1899_v33, %v1903_v36  ;;  %v1911_v41 = vld [vmem:[#allocation16 + $0x70] sm:$0xff] }
 0x2dc   :  { %v3305_v47 = vadd.f32 %v1226_v46, %v374_v39  ;;  %v1230_v50 = vmax.f32 %v3303_v43, 0.0  ;;  %v3135_v39 = vcombine.high %v1899_v33, %v1903_v36  ;;  %v3142_v42 = vcombine.low %v1907_v40, %v1911_v41  ;;  %v1915_v44 = vld [vmem:[#allocation16 + $0x90] sm:$0xff]  ;;  %v1913_v33 = vld [vmem:[#allocation16 + $0x80] sm:$0xff] }
 0x2dd   :  { %v1231_v49 = vmax.f32 %v3304_v45, 0.0  ;;  %v3143_v43 = vcombine.high %v1907_v40, %v1911_v41  ;;  %v1919_v45 = vld [vmem:[#allocation16 + $0xb0] sm:$0xff]  ;;  %v1917_v36 = vld [vmem:[#allocation16 + $0xa0] sm:$0xff] }
 0x2de   :  { %v1232_v51 = vmax.f32 %v3305_v47, 0.0  ;;  %2789 = vmatprep.subr.bf16.mxu0 %v3135_v39  ;;  %v3150_v46 = vcombine.low %v1915_v44, %v1919_v45  ;;  %v3151_v47 = vcombine.high %v1915_v44, %v1919_v45  ;;  %v3147_v39 = vcombine.high %v1913_v33, %v1917_v36  ;;  %v1921_v40 = vld [vmem:[#allocation16 + $0xc0] sm:$0xff] }
 0x2df   :  { %v1233_v52 = vpack.c.bf16 %v1231_v49, %v1229_v48  ;;  %2790 = vmatpush1.bf16.msra.mxu0 %v3134_v38  ;;  %v1923_v48 = vld [vmem:[#allocation16 + $0xd0] sm:$0xff]  ;;  %v1925_v41 = vld [vmem:[#allocation16 + $0xe0] sm:$0xff] }
 0x2e0   :  { %v1234_v53 = vpack.c.bf16 %v1232_v51, %v1230_v50  ;;  %2791 = vmatprep.subr.bf16.mxu0 %v3143_v43  ;;  %v1927_v49 = vld [vmem:[#allocation16 + $0xf0] sm:$0xff]  ;;  %v3155_v43 = vcombine.high %v1921_v40, %v1925_v41  ;;  %v1929_v44 = vld [vmem:[#allocation16 + $0x100] sm:$0xff] }
 0x2e1   :  { %v3158_v50 = vcombine.low %v1923_v48, %v1927_v49  ;;  %v3159_v51 = vcombine.high %v1923_v48, %v1927_v49  ;;  %v1933_v45 = vld [vmem:[#allocation16 + $0x120] sm:$0xff] }
 0x2e2   :  { %1402 = vmatprep.mubr.bf16.mxu1 %v1234_v53  ;;  %v1935_v53 = vld [vmem:[#allocation16 + $0x130] sm:$0xff]  ;;  %v1941_v48 = vld [vmem:[#allocation16 + $0x160] sm:$0xff]  ;;  %v3162_v49 = vcombine.low %v1929_v44, %v1933_v45 }
 0x2e3   :  { %1403 = vmatmul.mubr.bf16.vlgmr.msra.gmra.mrb[0].mxu1 %v1233_v52  ;;  %2792 = vmatpush1.bf16.msra.mxu0 %v3142_v42  ;;  %v1931_v52 = vld [vmem:[#allocation16 + $0x110] sm:$0xff]  ;;  %v3146_v42 = vcombine.low %v1913_v33, %v1917_v36 }
 0x2e4   :  { %1523 = vmatpush1.bf16.msra.mxu1 %v3550_v54  ;;  %1554 = vmatprep.mubr.bf16.mxu1 %v4028_v5  ;;  %v3166_v54 = vcombine.low %v1931_v52, %v1935_v53 }
 0x2e5   :  { %1524 = vmatprep.subr.bf16.mxu1 %v3555_v55  ;;  %2793 = vmatprep.subr.bf16.mxu0 %v3151_v47  ;;  %v3167_v55 = vcombine.high %v1931_v52, %v1935_v53  ;;  %v1937_v47 = vld [vmem:[#allocation16 + $0x140] sm:$0xff] }
 0x2e6   :  { %v1949_v52 = vld [vmem:[#allocation16 + $0x1a0] sm:$0xff]  ;;  %v3170_v53 = vcombine.low %v1937_v47, %v1941_v48 }
 0x2e7   :  { %2794 = vmatpush1.bf16.msra.mxu0 %v3150_v46  ;;  %v3154_v46 = vcombine.low %v1921_v40, %v1925_v41  ;;  %v1995_v40 = vld [vmem:[#allocation16 + $0x310] sm:$0xff] }
 0x2e8   :  { %1525 = vmatpush1.bf16.msra.mxu1 %v3553_v56  ;;  %2795 = vmatprep.subr.bf16.mxu0 %v3159_v51  ;;  %v1939_v56 = vld [vmem:[#allocation16 + $0x150] sm:$0xff]  ;;  %v1945_v51 = vld [vmem:[#allocation16 + $0x180] sm:$0xff] }
 0x2e9   :  { %1526 = vmatprep.subr.bf16.mxu1 %v3558_v57  ;;  %v1943_v57 = vld [vmem:[#allocation16 + $0x170] sm:$0xff] }
 0x2ea   :  { %v1999_v41 = vld [vmem:[#allocation16 + $0x330] sm:$0xff] }
 0x2eb   :  { %2796 = vmatpush1.bf16.msra.mxu0 %v3158_v50  ;;  %v3171_v50 = vcombine.high %v1937_v47, %v1941_v48  ;;  %v2003_v47 = vld [vmem:[#allocation16 + $0x350] sm:$0xff] }
 0x2ec   :  { %1527 = vmatpush1.bf16.msra.mxu1 %v3556_v58  ;;  %2797 = vmatprep.subr.bf16.mxu0 %v3167_v55  ;;  %v3174_v58 = vcombine.low %v1939_v56, %v1943_v57  ;;  %v3178_v55 = vcombine.low %v1945_v51, %v1949_v52  ;;  %v2007_v48 = vld [vmem:[#allocation16 + $0x370] sm:$0xff] }
 0x2ed   :  { %1528 = vmatprep.subr.bf16.mxu1 %v3561_v59  ;;  %v3175_v59 = vcombine.high %v1939_v56, %v1943_v57  ;;  %v1947_v56 = vld [vmem:[#allocation16 + $0x190] sm:$0xff] }
 0x2ee   :  { %v1951_v57 = vld [vmem:[#allocation16 + $0x1b0] sm:$0xff] }
 0x2ef   :  { %2798 = vmatpush1.bf16.msra.mxu0 %v3166_v54  ;;  %v3179_v54 = vcombine.high %v1945_v51, %v1949_v52  ;;  %v3239_v52 = vcombine.high %v2003_v47, %v2007_v48 }
 0x2f0   :  { %1529 = vmatpush1.bf16.msra.mxu1 %v3559_v60  ;;  %2799 = vmatprep.subr.bf16.mxu0 %v3175_v59  ;;  %v1430_v60 = vld [vmem:[#allocation20] sm:$0x3]  ;;  %v3182_v59 = vcombine.low %v1947_v56, %v1951_v57 }
 0x2f1   :  { %1530 = vmatprep.subr.bf16.mxu1 %v3564_v61  ;;  %v1435_v61 = vrot.slane %v1430_v60, %v4333_v35 }
 0x2f3   :  { %2800 = vmatpush1.bf16.msra.mxu0 %v3174_v58  ;;  %v3183_v58 = vcombine.high %v1947_v56, %v1951_v57  ;;  %v2013_v56 = vld [vmem:[#allocation16 + $0x3a0] sm:$0xff] }
 0x2f4   :  { %1531 = vmatpush1.bf16.msra.mxu1 %v3562_v62  ;;  %v1439_v62 = vrot.slane %v1430_v60, %v4336_v37  ;;  %v1953_v60 = vld [vmem:[#allocation16 + $0x1c0] sm:$0xff] }
 0x2f5   :  { %1532 = vmatprep.subr.bf16.mxu1 %v3567_v63  ;;  %2801 = vmatprep.subr.bf16.mxu0 %v3183_v58  ;;  %v2011_v58 = vld [vmem:[#allocation16 + $0x390] sm:$0xff] }
 0x2f7   :  { %2802 = vmatpush1.bf16.msra.mxu0 %v3182_v59  ;;  %v2015_v59 = vld [vmem:[#allocation16 + $0x3b0] sm:$0xff] }
 0x2f8   :  { %1533 = vmatpush1.bf16.msra.mxu1 %v3565_v0 }
 0x2f9   :  { %1534 = vmatprep.subr.bf16.mxu1 %v3570_v1 }
 0x2fc   :  { %1535 = vmatpush1.bf16.msra.mxu1 %v3568_v2 }
 0x2fd   :  { %1536 = vmatprep.subr.bf16.mxu1 %v3573_v3 }
 0x300   :  { %1537 = vmatpush1.bf16.msra.mxu1 %v3571_v4 }
 0x301   :  { %3280 = vmatprep.subr.bf16.mxu1 %v3574_v6 }
 0x3b6   :  { %v3274_v7 = vpop.f32.mrb[0].mxu1 }
 0x3b7   :  { %v3275_v9 = vpop.f32.mrb[1].mxu1 }
 0x3b8   :  { %v3276_v10 = vadd.f32 %v3275_v9, %v3274_v7  ;;  %v3277_v11 = vpop.f32.mrb[2].mxu1  ;;  %v3590_v9 = vld [vmem:[#allocation13] ss:$8 sps:$4 sm:$0xff]  }
 0x3b9   :  { %v3278_v13 = vpop.f32.mrb[3].mxu1  ;;  %v3595_v11 = vld [vmem:[#allocation13 + $0x14] ss:$8 sps:$4 sm:$0xff]  }
 0x3ba   :  { %v4341_v14 = vadd.f32 %v3276_v10, %v3064_v8  ;;  %v3598_v13 = vld [vmem:[#allocation13 + $0x24] ss:$8 sps:$4 sm:$0xff]  }
 0x3bc   :  { %v1412_v15 = vadd.f32 %v1411_v12, %v4341_v14  ;;  %1410 = vst [vmem:[#allocation25] sm:$0xff] %v4341_v14  ;;  %v3593_v12 = vld [vmem:[#allocation13 + $0x10] ss:$8 sps:$4 sm:$0xff]  }
 0x3be   :  { %v1413_v17 = vpack.c.bf16 %v1412_v15, %v1412_v15  ;;  %v3596_v15 = vld [vmem:[#allocation13 + $0x20] ss:$8 sps:$4 sm:$0xff]  }
 0x3c0   :  { %1555 = vmatmul.mubr.bf16.vlgmr.msra.gmra.mrb[4].mxu1 %v1413_v17  ;;  %v3599_v17 = vld [vmem:[#allocation13 + $0x30] ss:$8 sps:$4 sm:$0xff]  }
 0x3c1   :  { %3281 = vmatpush3.bf16.msra.mxu1 %v3575_v16  ;;  %v3601_v16 = vld [vmem:[#allocation13 + $0x34] ss:$8 sps:$4 sm:$0xff]  }
 0x3c2   :  { %3282 = vmatprep.subr.bf16.mxu1 %v3576_v18  ;;  %v3604_v18 = vld [vmem:[#allocation13 + $0x44] ss:$8 sps:$4 sm:$0xff]  }
 0x3c5   :  { %3283 = vmatpush3.bf16.msra.mxu1 %v3577_v19  ;;  %v3602_v19 = vld [vmem:[#allocation13 + $0x40] ss:$8 sps:$4 sm:$0xff]  }
 0x3c6   :  { %3284 = vmatprep.subr.bf16.mxu1 %v3578_v20  ;;  %v3607_v20 = vld [vmem:[#allocation13 + $0x54] ss:$8 sps:$4 sm:$0xff]  }
 0x3c9   :  { %3285 = vmatpush3.bf16.msra.mxu1 %v3579_v21  ;;  %v3605_v21 = vld [vmem:[#allocation13 + $0x50] ss:$8 sps:$4 sm:$0xff]  }
 0x3ca   :  { %3286 = vmatprep.subr.bf16.mxu1 %v3580_v22  ;;  %v3610_v22 = vld [vmem:[#allocation13 + $0x64] ss:$8 sps:$4 sm:$0xff]  }
 0x3cd   :  { %3287 = vmatpush3.bf16.msra.mxu1 %v3581_v23  ;;  %v3613_v23 = vld [vmem:[#allocation13 + $0x74] ss:$8 sps:$4 sm:$0xff]  }
 0x3ce   :  { %3288 = vmatprep.subr.bf16.mxu1 %v3582_v24  ;;  %v1897_v24 = vld [vmem:[#allocation16] sm:$0xff] }
 0x3d1   :  { %3289 = vmatpush3.bf16.msra.mxu1 %v3583_v25  ;;  %v1901_v25 = vld [vmem:[#allocation16 + $0x20] sm:$0xff] }
 0x3d2   :  { %3290 = vmatprep.subr.bf16.mxu1 %v3584_v26  ;;  %v3611_v26 = vld [vmem:[#allocation13 + $0x70] ss:$8 sps:$4 sm:$0xff]  }
 0x3d5   :  { %3291 = vmatpush3.bf16.msra.mxu1 %v3585_v27  ;;  %v3131_v27 = vcombine.high %v1897_v24, %v1901_v25 }
 0x3d6   :  { %3292 = vmatprep.subr.bf16.mxu1 %v3586_v28  ;;  %v1905_v28 = vld [vmem:[#allocation16 + $0x40] sm:$0xff] }
 0x3d9   :  { %3293 = vmatpush3.bf16.msra.mxu1 %v3587_v29  ;;  %v1909_v29 = vld [vmem:[#allocation16 + $0x60] sm:$0xff] }
 0x3da   :  { %3294 = vmatprep.subr.bf16.mxu1 %v3588_v30  ;;  %v3130_v30 = vcombine.low %v1897_v24, %v1901_v25  ;;  %v3138_v38 = vcombine.low %v1905_v28, %v1909_v29 }
 0x3dd   :  { %3295 = vmatpush3.bf16.msra.mxu1 %v3589_v31  ;;  %v1743_v31 = vpack.c.bf16 %v4341_v14, %v4341_v14  ;;  %v3163_v14 = vcombine.high %v1929_v44, %v1933_v45  ;;  %v3231_v45 = vcombine.high %v1995_v40, %v1999_v41 }
 0x3de   :  { %1852 = vmatprep.subr.bf16.mxu1 %v3592_v32  ;;  %v3139_v32 = vcombine.high %v1905_v28, %v1909_v29  ;;  %v1989_v28 = vld [vmem:[#allocation16 + $0x2e0] sm:$0xff]  ;;  %v1987_v29 = vld [vmem:[#allocation16 + $0x2d0] sm:$0xff] }
 0x493   :  { %v1556_v63 = vpop.f32.mrb[4].mxu1 }
 0x494   :  { %v1557_v0 = vadd.f32 %v1556_v63, %v1435_v61  ;;  %v1558_v1 = vpop.f32.mrb[5].mxu1  ;;  %v1957_v61 = vld [vmem:[#allocation16 + $0x1e0] sm:$0xff]  ;;  %v1955_v63 = vld [vmem:[#allocation16 + $0x1d0] sm:$0xff] }
 0x495   :  { %v1559_v2 = vadd.f32 %v1558_v1, %v1439_v62  ;;  %v1560_v3 = vpop.f32.mrb[6].mxu1  ;;  %v3187_v62 = vcombine.high %v1953_v60, %v1957_v61  ;;  %v3186_v1 = vcombine.low %v1953_v60, %v1957_v61  ;;  %v3247_v61 = vcombine.high %v2011_v58, %v2015_v59 }
 0x496   :  { %v1563_v4 = vmax.f32 %v1557_v0, 0.0  ;;  %v1561_v6 = vpop.f32.mrb[7].mxu1  ;;  %v1959_v0 = vld [vmem:[#allocation16 + $0x1f0] sm:$0xff] }
 0x497   :  { %v1564_v7 = vmax.f32 %v1559_v2, 0.0  ;;  %v3191_v2 = vcombine.high %v1955_v63, %v1959_v0  ;;  %v3190_v3 = vcombine.low %v1955_v63, %v1959_v0  ;;  %v1965_v6 = vld [vmem:[#allocation16 + $0x220] sm:$0xff] }
 0x498   :  { %v1565_v10 = vpack.c.bf16 %v1563_v4, %v1563_v4  ;;  %v1961_v4 = vld [vmem:[#allocation16 + $0x200] sm:$0xff] }
 0x499   :  { %v1566_v8 = vpack.c.bf16 %v1564_v7, %v1564_v7  ;;  %2803 = vmatprep.subr.bf16.mxu0 %v3191_v2  ;;  %v3194_v7 = vcombine.low %v1961_v4, %v1965_v6  ;;  %v2017_v63 = vld [vmem:[#allocation16 + $0x3c0] sm:$0xff]  ;;  %v2019_v2 = vld [vmem:[#allocation16 + $0x3d0] sm:$0xff] }
 0x49a   :  { %2804 = vmatpush1.bf16.msra.mxu0 %v3190_v3  ;;  %v2021_v0 = vld [vmem:[#allocation16 + $0x3e0] sm:$0xff]  ;;  %v2023_v3 = vld [vmem:[#allocation16 + $0x3f0] sm:$0xff] }
 0x49b   :  { %1734 = vmatprep.mubr.bf16.mxu1 %v1566_v8  ;;  %v3195_v8 = vcombine.high %v1961_v4, %v1965_v6  ;;  %v3250_v4 = vcombine.low %v2017_v63, %v2021_v0  ;;  %v3255_v6 = vcombine.high %v2019_v2, %v2023_v3 }
 0x49c   :  { %1735 = vmatmul.mubr.bf16.vlgmr.msra.gmra.mrb[8].mxu1 %v1565_v10  ;;  %v1967_v10 = vld [vmem:[#allocation16 + $0x230] sm:$0xff] }
 0x49d   :  { %1853 = vmatpush1.bf16.msra.mxu1 %v3590_v9  ;;  %1884 = vmatprep.mubr.bf16.mxu1 %v4028_v5  ;;  %v3608_v5 = vld [vmem:[#allocation13 + $0x60] ss:$8 sps:$4 sm:$0xff]   ;;  %v1963_v9 = vld [vmem:[#allocation16 + $0x210] sm:$0xff] }
 0x49e   :  { %1854 = vmatprep.subr.bf16.mxu1 %v3595_v11  ;;  %v1969_v11 = vld [vmem:[#allocation16 + $0x240] sm:$0xff] }
 0x4a1   :  { %1855 = vmatpush1.bf16.msra.mxu1 %v3593_v12  ;;  %v3198_v12 = vcombine.low %v1963_v9, %v1967_v10 }
 0x4a2   :  { %1856 = vmatprep.subr.bf16.mxu1 %v3598_v13  ;;  %v3199_v13 = vcombine.high %v1963_v9, %v1967_v10  ;;  %v1902_v9 = vld [vmem:[#allocation16 + $0x28] sm:$0xff] }
 0x4a4   :  { %2805 = vmatprep.subr.bf16.mxu0 %v3199_v13  ;;  %v3097_v13 = vld [vmem:[#allocation23] ss:$0 sm:$0xff] }
 0x4a5   :  { %1857 = vmatpush1.bf16.msra.mxu1 %v3596_v15  ;;  %v1973_v15 = vld [vmem:[#allocation16 + $0x260] sm:$0xff]  ;;  %2806 = vmatpush1.bf16.msra.mxu0 %v3198_v12 }
 0x4a6   :  { %1858 = vmatprep.subr.bf16.mxu1 %v3601_v16  ;;  %v1971_v16 = vld [vmem:[#allocation16 + $0x250] sm:$0xff] }
 0x4a9   :  { %1859 = vmatpush1.bf16.msra.mxu1 %v3599_v17  ;;  %v1975_v17 = vld [vmem:[#allocation16 + $0x270] sm:$0xff] }
 0x4aa   :  { %1860 = vmatprep.subr.bf16.mxu1 %v3604_v18  ;;  %v3203_v18 = vcombine.high %v1969_v11, %v1973_v15  ;;  %v3206_v24 = vcombine.low %v1971_v16, %v1975_v17 }
 0x4ad   :  { %1861 = vmatpush1.bf16.msra.mxu1 %v3602_v19  ;;  %v3207_v19 = vcombine.high %v1971_v16, %v1975_v17 }
 0x4ae   :  { %1862 = vmatprep.subr.bf16.mxu1 %v3607_v20  ;;  %v1977_v20 = vld [vmem:[#allocation16 + $0x280] sm:$0xff] }
 0x4af   :  { %2807 = vmatprep.subr.bf16.mxu0 %v3207_v19 }
 0x4b0   :  { %2808 = vmatpush1.bf16.msra.mxu0 %v3206_v24 }
 0x4b1   :  { %1863 = vmatpush1.bf16.msra.mxu1 %v3605_v21  ;;  %v1981_v21 = vld [vmem:[#allocation16 + $0x2a0] sm:$0xff] }
 0x4b2   :  { %1864 = vmatprep.subr.bf16.mxu1 %v3610_v22  ;;  %v1979_v22 = vld [vmem:[#allocation16 + $0x290] sm:$0xff]  ;;  %v3211_v25 = vcombine.high %v1977_v20, %v1981_v21 }
 0x4b5   :  { %1865 = vmatpush1.bf16.msra.mxu1 %v3608_v5  ;;  %v3202_v5 = vcombine.low %v1969_v11, %v1973_v15 }
 0x4b6   :  { %1866 = vmatprep.subr.bf16.mxu1 %v3613_v23  ;;  %v1983_v23 = vld [vmem:[#allocation16 + $0x2b0] sm:$0xff] }
 0x4b9   :  { %1867 = vmatpush1.bf16.msra.mxu1 %v3611_v26  ;;  %v3215_v26 = vcombine.high %v1979_v22, %v1983_v23 }
 0x4ba   :  { %2707 = vmatprep.subr.bf16.mxu1 %v3131_v27  ;;  %v1985_v27 = vld [vmem:[#allocation16 + $0x2c0] sm:$0xff] }
 0x4bb   :  { %v3219_v33 = vcombine.high %v1985_v27, %v1989_v28  ;;  %2809 = vmatprep.subr.bf16.mxu0 %v3215_v26 }
 0x4bc   :  { %1885 = vmatmul.mubr.bf16.vlgmr.msra.gmra.mrb[12].mxu1 %v1743_v31  ;;  %v3210_v31 = vcombine.low %v1977_v20, %v1981_v21  ;;  %v1760_v20 = vld [vmem:[#allocation14] sm:$0x3] }
 0x4bd   :  { %2708 = vmatpush1.bf16.msra.mxu1 %v3130_v30  ;;  %v1991_v30 = vld [vmem:[#allocation16 + $0x2f0] sm:$0xff]  ;;  %v1765_v21 = vrot.slane %v1760_v20, %v4333_v35 }
 0x4be   :  { %2709 = vmatprep.subr.bf16.mxu1 %v3139_v32  ;;  %v3214_v32 = vcombine.low %v1979_v22, %v1983_v23  ;;  %v3223_v36 = vcombine.high %v1987_v29, %v1991_v30  ;;  %v1769_v22 = vrot.slane %v1760_v20, %v4336_v37  ;;  %v2006_v20 = vld [vmem:[#allocation16 + $0x368] sm:$0xff] }
 0x4c0   :  { %2810 = vmatpush1.bf16.msra.mxu0 %v3214_v32 }
 0x4c1   :  { %2710 = vmatpush1.bf16.msra.mxu1 %v3138_v38  ;;  %v1993_v38 = vld [vmem:[#allocation16 + $0x300] sm:$0xff]  ;;  %2811 = vmatprep.subr.bf16.mxu0 %v3223_v36 }
 0x4c2   :  { %2711 = vmatprep.subr.bf16.mxu1 %v3147_v39  ;;  %v1997_v39 = vld [vmem:[#allocation16 + $0x320] sm:$0xff] }
 0x4c3   :  { %v3227_v44 = vcombine.high %v1993_v38, %v1997_v39 }
 0x4c5   :  { %2712 = vmatpush1.bf16.msra.mxu1 %v3146_v42  ;;  %v3218_v42 = vcombine.low %v1985_v27, %v1989_v28 }
 0x4c6   :  { %2713 = vmatprep.subr.bf16.mxu1 %v3155_v43  ;;  %v3222_v43 = vcombine.low %v1987_v29, %v1991_v30  ;;  %v1906_v30 = vld [vmem:[#allocation16 + $0x48] sm:$0xff] }
 0x4c8   :  { %2812 = vmatpush1.bf16.msra.mxu0 %v3222_v43  ;;  %v1926_v43 = vld [vmem:[#allocation16 + $0xe8] sm:$0xff] }
 0x4c9   :  { %2714 = vmatpush1.bf16.msra.mxu1 %v3154_v46  ;;  %v2001_v46 = vld [vmem:[#allocation16 + $0x340] sm:$0xff]  ;;  %2813 = vmatprep.subr.bf16.mxu0 %v3231_v45 }
 0x4ca   :  { %2715 = vmatprep.subr.bf16.mxu1 %v3163_v14  ;;  %v2005_v14 = vld [vmem:[#allocation16 + $0x360] sm:$0xff] }
 0x4cb   :  { %v3235_v51 = vcombine.high %v2001_v46, %v2005_v14 }
 0x4cd   :  { %2716 = vmatpush1.bf16.msra.mxu1 %v3162_v49  ;;  %v3226_v49 = vcombine.low %v1993_v38, %v1997_v39  ;;  %v1914_v38 = vld [vmem:[#allocation16 + $0x88] sm:$0xff] }
 0x4ce   :  { %2717 = vmatprep.subr.bf16.mxu1 %v3171_v50  ;;  %v3230_v50 = vcombine.low %v1995_v40, %v1999_v41  ;;  %v1918_v39 = vld [vmem:[#allocation16 + $0xa8] sm:$0xff] }
 0x4cf   :  { %v3149_v41 = vcombine.high %v1914_v38, %v1918_v39 }
 0x4d0   :  { %2814 = vmatpush1.bf16.msra.mxu0 %v3230_v50  ;;  %v1942_v50 = vld [vmem:[#allocation16 + $0x168] sm:$0xff] }
 0x4d1   :  { %2718 = vmatpush1.bf16.msra.mxu1 %v3170_v53  ;;  %v3234_v53 = vcombine.low %v2001_v46, %v2005_v14  ;;  %2815 = vmatprep.subr.bf16.mxu0 %v3239_v52  ;;  %v1930_v46 = vld [vmem:[#allocation16 + $0x108] sm:$0xff] }
 0x4d2   :  { %2719 = vmatprep.subr.bf16.mxu1 %v3179_v54  ;;  %v3238_v54 = vcombine.low %v2003_v47, %v2007_v48  ;;  %v1934_v14 = vld [vmem:[#allocation16 + $0x128] sm:$0xff] }
 0x4d3   :  { %v3165_v48 = vcombine.high %v1930_v46, %v1934_v14 }
 0x4d4   :  { %2816 = vmatpush1.bf16.msra.mxu0 %v3238_v54  ;;  %v1950_v54 = vld [vmem:[#allocation16 + $0x1a8] sm:$0xff] }
 0x4d5   :  { %2720 = vmatpush1.bf16.msra.mxu1 %v3178_v55  ;;  %v2009_v55 = vld [vmem:[#allocation16 + $0x380] sm:$0xff]  ;;  %2817 = vmatprep.subr.bf16.mxu0 %v3247_v61  ;;  %v1962_v61 = vld [vmem:[#allocation16 + $0x208] sm:$0xff] }
 0x4d6   :  { %2721 = vmatprep.subr.bf16.mxu1 %v3187_v62  ;;  %v3243_v57 = vcombine.high %v2009_v55, %v2013_v56  ;;  %v3242_v60 = vcombine.low %v2009_v55, %v2013_v56  ;;  %v3246_v62 = vcombine.low %v2011_v58, %v2015_v59  ;;  %v1958_v58 = vld [vmem:[#allocation16 + $0x1e8] sm:$0xff] }
 0x4d8   :  { %2818 = vmatpush1.bf16.msra.mxu0 %v3246_v62  ;;  %v1966_v62 = vld [vmem:[#allocation16 + $0x228] sm:$0xff] }
 0x4d9   :  { %2722 = vmatpush1.bf16.msra.mxu1 %v3186_v1  ;;  %v3251_v1 = vcombine.high %v2017_v63, %v2021_v0  ;;  %2819 = vmatprep.subr.bf16.mxu0 %v3255_v6  ;;  %v3197_v0 = vcombine.high %v1962_v61, %v1966_v62  ;;  %v1978_v6 = vld [vmem:[#allocation16 + $0x288] sm:$0xff] }
 0x4da   :  { %2723 = vmatprep.subr.bf16.mxu1 %v3195_v8  ;;  %v1898_v8 = vld [vmem:[#allocation16 + $0x8] sm:$0xff] }
 0x4db   :  { %v3133_v10 = vcombine.high %v1898_v8, %v1902_v9  ;;  %v3132_v11 = vcombine.low %v1898_v8, %v1902_v9 }
 0x4dd   :  { %2724 = vmatpush1.bf16.msra.mxu1 %v3194_v7  ;;  %v3254_v7 = vcombine.low %v2019_v2, %v2023_v3  ;;  %v1974_v2 = vld [vmem:[#allocation16 + $0x268] sm:$0xff]  ;;  %v3196_v3 = vcombine.low %v1962_v61, %v1966_v62  ;;  %v1956_v61 = vld [vmem:[#allocation16 + $0x1d8] sm:$0xff] }
 0x4de   :  { %2725 = vmatprep.subr.bf16.mxu1 %v3203_v18  ;;  %v1960_v62 = vld [vmem:[#allocation16 + $0x1f8] sm:$0xff] }
 0x4df   :  { %2820 = vmatpush1.bf16.msra.mxu0 %v3254_v7  ;;  %v1982_v7 = vld [vmem:[#allocation16 + $0x2a8] sm:$0xff] }
 0x4e0   :  { %v3213_v9 = vcombine.high %v1978_v6, %v1982_v7 }
 0x4e1   :  { %2726 = vmatpush1.bf16.msra.mxu1 %v3202_v5 }
 0x4e2   :  { %2727 = vmatprep.subr.bf16.mxu1 %v3211_v25 }
 0x4e5   :  { %2728 = vmatpush1.bf16.msra.mxu1 %v3210_v31  ;;  %v1910_v31 = vld [vmem:[#allocation16 + $0x68] sm:$0xff] }
 0x4e6   :  { %2729 = vmatprep.subr.bf16.mxu1 %v3219_v33  ;;  %v3141_v36 = vcombine.high %v1906_v30, %v1910_v31  ;;  %v3140_v40 = vcombine.low %v1906_v30, %v1910_v31  ;;  %v1900_v30 = vld [vmem:[#allocation16 + $0x18] sm:$0xff] }
 0x4e7   :  { %v1904_v31 = vld [vmem:[#allocation16 + $0x38] sm:$0xff] }
 0x4e9   :  { %2730 = vmatpush1.bf16.msra.mxu1 %v3218_v42  ;;  %v1922_v42 = vld [vmem:[#allocation16 + $0xc8] sm:$0xff] }
 0x4ea   :  { %2731 = vmatprep.subr.bf16.mxu1 %v3227_v44  ;;  %v3148_v44 = vcombine.low %v1914_v38, %v1918_v39  ;;  %v3157_v45 = vcombine.high %v1922_v42, %v1926_v43  ;;  %v3156_v47 = vcombine.low %v1922_v42, %v1926_v43  ;;  %v3137_v38 = vcombine.high %v1900_v30, %v1904_v31  ;;  %v1908_v39 = vld [vmem:[#allocation16 + $0x58] sm:$0xff] }
 0x4eb   :  { %v1916_v43 = vld [vmem:[#allocation16 + $0x98] sm:$0xff] }
 0x4ed   :  { %2732 = vmatpush1.bf16.msra.mxu1 %v3226_v49  ;;  %v1938_v49 = vld [vmem:[#allocation16 + $0x148] sm:$0xff] }
 0x4ee   :  { %2733 = vmatprep.subr.bf16.mxu1 %v3235_v51  ;;  %v3164_v51 = vcombine.low %v1930_v46, %v1934_v14  ;;  %v3173_v52 = vcombine.high %v1938_v49, %v1942_v50  ;;  %v3172_v55 = vcombine.low %v1938_v49, %v1942_v50  ;;  %v1924_v14 = vld [vmem:[#allocation16 + $0xd8] sm:$0xff] }
 0x4ef   :  { %v1932_v50 = vld [vmem:[#allocation16 + $0x118] sm:$0xff] }
 0x4f1   :  { %2734 = vmatpush1.bf16.msra.mxu1 %v3234_v53  ;;  %v1946_v53 = vld [vmem:[#allocation16 + $0x188] sm:$0xff] }
 0x4f2   :  { %2735 = vmatprep.subr.bf16.mxu1 %v3243_v57  ;;  %v3181_v56 = vcombine.high %v1946_v53, %v1950_v54  ;;  %v1954_v57 = vld [vmem:[#allocation16 + $0x1c8] sm:$0xff]  ;;  %v3180_v59 = vcombine.low %v1946_v53, %v1950_v54  ;;  %v1940_v54 = vld [vmem:[#allocation16 + $0x158] sm:$0xff] }
 0x4f3   :  { %v3188_v63 = vcombine.low %v1954_v57, %v1958_v58 }
 0x4f5   :  { %2736 = vmatpush1.bf16.msra.mxu1 %v3242_v60  ;;  %v3189_v60 = vcombine.high %v1954_v57, %v1958_v58  ;;  %v1948_v57 = vld [vmem:[#allocation16 + $0x198] sm:$0xff] }
 0x4f6   :  { %2737 = vmatprep.subr.bf16.mxu1 %v3251_v1  ;;  %v1970_v1 = vld [vmem:[#allocation16 + $0x248] sm:$0xff]  ;;  %v1952_v58 = vld [vmem:[#allocation16 + $0x1b8] sm:$0xff] }
 0x4f7   :  { %v3204_v8 = vcombine.low %v1970_v1, %v1974_v2 }
 0x4f9   :  { %2738 = vmatpush1.bf16.msra.mxu1 %v3250_v4  ;;  %v3205_v4 = vcombine.high %v1970_v1, %v1974_v2  ;;  %v1964_v1 = vld [vmem:[#allocation16 + $0x218] sm:$0xff] }
 0x4fa   :  { %2748 = vmatprep.subr.bf16.mxu1 %v3133_v10  ;;  %v1986_v10 = vld [vmem:[#allocation16 + $0x2c8] sm:$0xff]  ;;  %v1968_v2 = vld [vmem:[#allocation16 + $0x238] sm:$0xff] }
 0x56f   :  { %v3296_v12 = vpop.f32.mrb[8].mxu1 }
 0x570   :  { %v3297_v15 = vpop.f32.mrb[9].mxu1 }
 0x571   :  { %v3298_v16 = vadd.f32 %v3297_v15, %v3296_v12  ;;  %v3299_v17 = vpop.f32.mrb[10].mxu1  ;;  %v3212_v12 = vcombine.low %v1978_v6, %v1982_v7  ;;  %v1994_v15 = vld [vmem:[#allocation16 + $0x308] sm:$0xff]  ;;  %v1972_v6 = vld [vmem:[#allocation16 + $0x258] sm:$0xff] }
 0x572   :  { %v3300_v18 = vpop.f32.mrb[11].mxu1  ;;  %v1976_v7 = vld [vmem:[#allocation16 + $0x278] sm:$0xff] }
 0x573   :  { %v1737_v19 = vadd.f32 %v3298_v16, %v3097_v13  ;;  %v1998_v16 = vld [vmem:[#allocation16 + $0x328] sm:$0xff] }
 0x574   :  { %v3229_v18 = vcombine.high %v1994_v15, %v1998_v16 }
 0x575   :  { %1742 = vst [vmem:[#allocation28] sm:$0xff] %v1737_v19  ;;  %v2002_v19 = vld [vmem:[#allocation16 + $0x348] sm:$0xff] }
 0x58f   :  { %v1886_v5 = vpop.f32.mrb[12].mxu1 }
 0x590   :  { %v1887_v23 = vadd.f32 %v1886_v5, %v1765_v21  ;;  %v1888_v24 = vpop.f32.mrb[13].mxu1  ;;  %v3228_v21 = vcombine.low %v1994_v15, %v1998_v16  ;;  %v2010_v5 = vld [vmem:[#allocation16 + $0x388] sm:$0xff]  ;;  %v1988_v15 = vld [vmem:[#allocation16 + $0x2d8] sm:$0xff] }
 0x591   :  { %v1889_v25 = vadd.f32 %v1888_v24, %v1769_v22  ;;  %v1890_v26 = vpop.f32.mrb[14].mxu1  ;;  %v3237_v22 = vcombine.high %v2002_v19, %v2006_v20  ;;  %v3236_v24 = vcombine.low %v2002_v19, %v2006_v20  ;;  %v1992_v16 = vld [vmem:[#allocation16 + $0x2f8] sm:$0xff] }
 0x592   :  { %v1893_v27 = vmax.f32 %v1887_v23, 0.0  ;;  %v1891_v28 = vpop.f32.mrb[15].mxu1  ;;  %v2014_v23 = vld [vmem:[#allocation16 + $0x3a8] sm:$0xff]  ;;  %v1996_v19 = vld [vmem:[#allocation16 + $0x318] sm:$0xff] }
 0x593   :  { %v1894_v29 = vmax.f32 %v1889_v25, 0.0  ;;  %v3245_v25 = vcombine.high %v2010_v5, %v2014_v23  ;;  %v2018_v26 = vld [vmem:[#allocation16 + $0x3c8] sm:$0xff]  ;;  %v3244_v28 = vcombine.low %v2010_v5, %v2014_v23  ;;  %v2000_v20 = vld [vmem:[#allocation16 + $0x338] sm:$0xff] }
 0x594   :  { %v4354_v33 = vpack.c.bf16 %v1893_v27, %v1893_v27  ;;  %v2022_v27 = vld [vmem:[#allocation16 + $0x3e8] sm:$0xff]  ;;  %v2004_v5 = vld [vmem:[#allocation16 + $0x358] sm:$0xff] }
 0x595   :  { %v4352_v32 = vpack.c.bf16 %v1894_v29, %v1894_v29  ;;  %v3253_v29 = vcombine.high %v2018_v26, %v2022_v27  ;;  %v2008_v23 = vld [vmem:[#allocation16 + $0x378] sm:$0xff] }
 0x597   :  { %2739 = vmatprep.mubr.bf16.mxu1 %v4352_v32  ;;  %2821 = vmatprep.mubr.bf16.mxu0 %v4352_v32 }
 0x598   :  { %2740 = vmatmul.mubr.bf16.vlgmr.msra.gmra.mrb[16].mxu1 %v4354_v33  ;;  %2822 = vmatmul.mubr.bf16.vlgmr.msra.gmra.mrb[4].mxu0 %v4354_v33 }
 0x599   :  { %2749 = vmatpush1.bf16.msra.mxu1 %v3132_v11  ;;  %2780 = vmatprep.mubr.bf16.mxu1 %v4352_v32  ;;  %v1990_v11 = vld [vmem:[#allocation16 + $0x2e8] sm:$0xff] }
 0x59a   :  { %2750 = vmatprep.subr.bf16.mxu1 %v3141_v36  ;;  %v3221_v13 = vcombine.high %v1986_v10, %v1990_v11  ;;  %v3220_v17 = vcombine.low %v1986_v10, %v1990_v11  ;;  %v3252_v36 = vcombine.low %v2018_v26, %v2022_v27  ;;  %v1980_v10 = vld [vmem:[#allocation16 + $0x298] sm:$0xff] }
 0x59b   :  { %v1984_v11 = vld [vmem:[#allocation16 + $0x2b8] sm:$0xff] }
 0x59c   :  { %v2012_v26 = vld [vmem:[#allocation16 + $0x398] sm:$0xff] }
 0x59d   :  { %2751 = vmatpush1.bf16.msra.mxu1 %v3140_v40  ;;  %v1912_v40 = vld [vmem:[#allocation16 + $0x78] sm:$0xff] }
 0x59e   :  { %2752 = vmatprep.subr.bf16.mxu1 %v3149_v41  ;;  %v3136_v41 = vcombine.low %v1900_v30, %v1904_v31  ;;  %v3145_v42 = vcombine.high %v1908_v39, %v1912_v40  ;;  %v2016_v27 = vld [vmem:[#allocation16 + $0x3b8] sm:$0xff] }
 0x59f   :  { %v2020_v30 = vld [vmem:[#allocation16 + $0x3d8] sm:$0xff] }
 0x5a0   :  { %v2024_v31 = vld [vmem:[#allocation16 + $0x3f8] sm:$0xff] }
 0x5a1   :  { %2753 = vmatpush1.bf16.msra.mxu1 %v3148_v44  ;;  %v1920_v44 = vld [vmem:[#allocation16 + $0xb8] sm:$0xff] }
 0x5a2   :  { %2754 = vmatprep.subr.bf16.mxu1 %v3157_v45  ;;  %v3144_v45 = vcombine.low %v1908_v39, %v1912_v40  ;;  %v3153_v46 = vcombine.high %v1916_v43, %v1920_v44  ;;  %v3256_v39 = vcombine.low %v2020_v30, %v2024_v31  ;;  %v2045_v40 = vsub.s32 4, %v4330_v34 }
 0x5a5   :  { %2755 = vmatpush1.bf16.msra.mxu1 %v3156_v47  ;;  %v1928_v47 = vld [vmem:[#allocation16 + $0xf8] sm:$0xff] }
 0x5a6   :  { %2756 = vmatprep.subr.bf16.mxu1 %v3165_v48  ;;  %v3152_v48 = vcombine.low %v1916_v43, %v1920_v44  ;;  %v3161_v49 = vcombine.high %v1924_v14, %v1928_v47 }
 0x5a9   :  { %2757 = vmatpush1.bf16.msra.mxu1 %v3164_v51  ;;  %v1936_v51 = vld [vmem:[#allocation16 + $0x138] sm:$0xff] }
 0x5aa   :  { %2758 = vmatprep.subr.bf16.mxu1 %v3173_v52  ;;  %v3160_v52 = vcombine.low %v1924_v14, %v1928_v47  ;;  %v3169_v53 = vcombine.high %v1932_v50, %v1936_v51 }
 0x5ad   :  { %2759 = vmatpush1.bf16.msra.mxu1 %v3172_v55  ;;  %v1944_v55 = vld [vmem:[#allocation16 + $0x178] sm:$0xff] }
 0x5ae   :  { %2760 = vmatprep.subr.bf16.mxu1 %v3181_v56  ;;  %v3168_v56 = vcombine.low %v1932_v50, %v1936_v51 }
 0x5b1   :  { %2761 = vmatpush1.bf16.msra.mxu1 %v3180_v59  ;;  %v3176_v59 = vcombine.low %v1940_v54, %v1944_v55 }
 0x5b2   :  { %2762 = vmatprep.subr.bf16.mxu1 %v3189_v60  ;;  %v3185_v60 = vcombine.high %v1948_v57, %v1952_v58 }
 0x5b5   :  { %2763 = vmatpush1.bf16.msra.mxu1 %v3188_v63  ;;  %v3184_v63 = vcombine.low %v1948_v57, %v1952_v58 }
 0x5b6   :  { %2764 = vmatprep.subr.bf16.mxu1 %v3197_v0  ;;  %v3193_v0 = vcombine.high %v1956_v61, %v1960_v62 }
 0x5b9   :  { %2765 = vmatpush1.bf16.msra.mxu1 %v3196_v3  ;;  %v3192_v3 = vcombine.low %v1956_v61, %v1960_v62 }
 0x5ba   :  { %2766 = vmatprep.subr.bf16.mxu1 %v3205_v4  ;;  %v3201_v4 = vcombine.high %v1964_v1, %v1968_v2 }
 0x5bd   :  { %2767 = vmatpush1.bf16.msra.mxu1 %v3204_v8  ;;  %v3200_v8 = vcombine.low %v1964_v1, %v1968_v2 }
 0x5be   :  { %2768 = vmatprep.subr.bf16.mxu1 %v3213_v9  ;;  %v3209_v9 = vcombine.high %v1972_v6, %v1976_v7 }
 0x5c1   :  { %2769 = vmatpush1.bf16.msra.mxu1 %v3212_v12  ;;  %v3208_v12 = vcombine.low %v1972_v6, %v1976_v7 }
 0x5c2   :  { %2770 = vmatprep.subr.bf16.mxu1 %v3221_v13  ;;  %v3217_v13 = vcombine.high %v1980_v10, %v1984_v11 }
 0x5c5   :  { %2771 = vmatpush1.bf16.msra.mxu1 %v3220_v17  ;;  %v3216_v17 = vcombine.low %v1980_v10, %v1984_v11 }
 0x5c6   :  { %2772 = vmatprep.subr.bf16.mxu1 %v3229_v18  ;;  %v3225_v18 = vcombine.high %v1988_v15, %v1992_v16 }
 0x5c9   :  { %2773 = vmatpush1.bf16.msra.mxu1 %v3228_v21  ;;  %v3224_v21 = vcombine.low %v1988_v15, %v1992_v16 }
 0x5ca   :  { %2774 = vmatprep.subr.bf16.mxu1 %v3237_v22  ;;  %v3233_v22 = vcombine.high %v1996_v19, %v2000_v20 }
 0x5cd   :  { %2775 = vmatpush1.bf16.msra.mxu1 %v3236_v24  ;;  %v3232_v24 = vcombine.low %v1996_v19, %v2000_v20 }
 0x5ce   :  { %2776 = vmatprep.subr.bf16.mxu1 %v3245_v25  ;;  %v3241_v25 = vcombine.high %v2004_v5, %v2008_v23 }
 0x5d1   :  { %2777 = vmatpush1.bf16.msra.mxu1 %v3244_v28  ;;  %v3240_v28 = vcombine.low %v2004_v5, %v2008_v23 }
 0x5d2   :  { %2778 = vmatprep.subr.bf16.mxu1 %v3253_v29  ;;  %v3249_v29 = vcombine.high %v2012_v26, %v2016_v27 }
 0x5d5   :  { %2779 = vmatpush1.bf16.msra.mxu1 %v3252_v36  ;;  %v3248_v36 = vcombine.low %v2012_v26, %v2016_v27 }
 0x5d6   :  { %2830 = vmatprep.subr.bf16.mxu1 %v3137_v38  ;;  %v3257_v38 = vcombine.high %v2020_v30, %v2024_v31 }
 0x5d8   :  { %2781 = vmatmul.mubr.bf16.vlgmr.msra.gmra.mrb[20].mxu1 %v4354_v33 }
 0x5d9   :  { %2831 = vmatpush1.bf16.msra.mxu1 %v3136_v41  ;;  %2862 = vmatprep.mubr.bf16.mxu1 %v4352_v32  ;;  %v3177_v32 = vcombine.high %v1940_v54, %v1944_v55  ;;  %v2025_v41 = vld [vmem:[#allocation17] sm:$0xff] }
 0x5da   :  { %2832 = vmatprep.subr.bf16.mxu1 %v3145_v42  ;;  %v2049_v42 = vsub.s32 5, %v4330_v34  ;;  %v2030_v43 = vrot.slane %v2025_v41, %v4333_v35  ;;  %v2046_v44 = vrot.slane %v2025_v41, %v2045_v40 }
 0x5dd   :  { %2833 = vmatpush1.bf16.msra.mxu1 %v3144_v45  ;;  %v2034_v45 = vrot.slane %v2025_v41, %v4336_v37 }
 0x5de   :  { %2834 = vmatprep.subr.bf16.mxu1 %v3153_v46  ;;  %v2050_v46 = vrot.slane %v2025_v41, %v2049_v42 }
 0x5e1   :  { %2835 = vmatpush1.bf16.msra.mxu1 %v3152_v48 }
 0x5e2   :  { %2836 = vmatprep.subr.bf16.mxu1 %v3161_v49 }
 0x5e5   :  { %2837 = vmatpush1.bf16.msra.mxu1 %v3160_v52 }
 0x5e6   :  { %2838 = vmatprep.subr.bf16.mxu1 %v3169_v53 }
 0x5e9   :  { %2839 = vmatpush1.bf16.msra.mxu1 %v3168_v56 }
 0x5ea   :  { %2840 = vmatprep.subr.bf16.mxu1 %v3177_v32 }
 0x5ed   :  { %2841 = vmatpush1.bf16.msra.mxu1 %v3176_v59 }
 0x5ee   :  { %2842 = vmatprep.subr.bf16.mxu1 %v3185_v60 }
 0x5f1   :  { %2843 = vmatpush1.bf16.msra.mxu1 %v3184_v63 }
 0x5f2   :  { %2844 = vmatprep.subr.bf16.mxu1 %v3193_v0 }
 0x5f5   :  { %2845 = vmatpush1.bf16.msra.mxu1 %v3192_v3 }
 0x5f6   :  { %2846 = vmatprep.subr.bf16.mxu1 %v3201_v4 }
 0x5f9   :  { %2847 = vmatpush1.bf16.msra.mxu1 %v3200_v8 }
 0x5fa   :  { %2848 = vmatprep.subr.bf16.mxu1 %v3209_v9 }
 0x5fd   :  { %2849 = vmatpush1.bf16.msra.mxu1 %v3208_v12 }
 0x5fe   :  { %2850 = vmatprep.subr.bf16.mxu1 %v3217_v13 }
 0x601   :  { %2851 = vmatpush1.bf16.msra.mxu1 %v3216_v17 }
 0x602   :  { %2852 = vmatprep.subr.bf16.mxu1 %v3225_v18 }
 0x605   :  { %2853 = vmatpush1.bf16.msra.mxu1 %v3224_v21 }
 0x606   :  { %2854 = vmatprep.subr.bf16.mxu1 %v3233_v22 }
 0x609   :  { %2855 = vmatpush1.bf16.msra.mxu1 %v3232_v24 }
 0x60a   :  { %2856 = vmatprep.subr.bf16.mxu1 %v3241_v25 }
 0x60d   :  { %2857 = vmatpush1.bf16.msra.mxu1 %v3240_v28 }
 0x60e   :  { %2858 = vmatprep.subr.bf16.mxu1 %v3249_v29 }
 0x611   :  { %2859 = vmatpush1.bf16.msra.mxu1 %v3248_v36 }
 0x612   :  { %2860 = vmatprep.subr.bf16.mxu1 %v3257_v38 }
 0x615   :  { %2861 = vmatpush1.bf16.msra.mxu1 %v3256_v39 }
 0x618   :  { %2863 = vmatmul.mubr.bf16.vlgmr.msra.gmra.mrb[24].mxu1 %v4354_v33 }
 0x66b   :  { %v2741_v14 = vpop.f32.mrb[16].mxu1  ;;  %v2823_v47 = vpop.f32.mrb[4].mxu0 }
 0x66c   :  { %v2742_v48 = vadd.f32 %v2741_v14, %v2030_v43  ;;  %v2824_v49 = vadd.f32 %v2823_v47, %v2046_v44  ;;  %v2743_v50 = vpop.f32.mrb[17].mxu1  ;;  %v2825_v51 = vpop.f32.mrb[5].mxu0 }
 0x66d   :  { %v2744_v52 = vadd.f32 %v2743_v50, %v2034_v45  ;;  %v2826_v53 = vadd.f32 %v2825_v51, %v2050_v46  ;;  %v2745_v33 = vpop.f32.mrb[18].mxu1  ;;  %v2827_v54 = vpop.f32.mrb[6].mxu0 }
 0x66e   :  { %2871 = vst [vmem:[#allocation26] sm:$0xff] %v2742_v48  ;;  %2875 = vst [vmem:[#allocation26 + $0x20] sm:$0xff] %v2824_v49  ;;  %v2746_v55 = vpop.f32.mrb[19].mxu1  ;;  %v2828_v56 = vpop.f32.mrb[7].mxu0 }
 0x66f   :  { %2872 = vst [vmem:[#allocation26 + $0x8] sm:$0xff] %v2744_v52  ;;  %2876 = vst [vmem:[#allocation26 + $0x28] sm:$0xff] %v2826_v53 }
 0x670   :  { %3933 = shalt.err (!%p3930_p4)
}
 0x671   :  { %s3934_s18 = scalar_lea.hbm %s4422_s14, 128 }
 0x672   :  { %p3935_p5 = scmp.ne.s32.totalorder %s4422_s14, %s3934_s18  ;;  %p3938_p6 = scmp.lt.u32.totalorder %s3934_s18, %s4422_s14 }
 0x674   :  { %p3940_p7 = pnand %p3938_p6, %p3935_p5 }
 0x676   :  { %3943 = shalt.err (!%p3940_p7)
}
 0x677   :  { %2888 = dma.vmem_to_hbm [thread:$0]  %s2886_s24, 128, %s4422_s14, [#allocation4]   ;;  %v2037_v35 = vsub.s32 2, %v4330_v34  ;;  %v2041_v37 = vsub.s32 3, %v4330_v34  ;;  %v2053_v0 = vsub.s32 6, %v4330_v34  ;;  %v2057_v1 = vsub.s32 7, %v4330_v34 }
 0x678   :  { %s4030_s14 = smov [#allocation26]   ;;  %s4031_s10 = smov [#allocation28]  }
 0x679   :  { %v2038_v32 = vrot.slane %v2025_v41, %v2037_v35  ;;  %v2042_v57 = vrot.slane %v2025_v41, %v2041_v37  ;;  %v2054_v2 = vrot.slane %v2025_v41, %v2053_v0  ;;  %v2058_v3 = vrot.slane %v2025_v41, %v2057_v1  ;;  %s2895_s5 = sshll.u32 %s4030_s14, 4  ;;  %s2905_s29 = sshll.u32 %s4031_s10, 4  ;;  %s2896_s5 = int_to_ptr.vmem [resolvable:$true] %s2895_s5  ;;  %s2906_s29 = int_to_ptr.vmem [resolvable:$true] %s2905_s29 }
 0x67a   :  { %s3944_s30 = scalar_lea.vmem %s2896_s5, 1024  ;;  %p3949_p9 = scmp.lt.s32.totalorder %s2896_s5, %s2896_s5 }
 0x67b   :  { %p3945_p8 = scmp.ne.s32.totalorder %s2896_s5, %s3944_s30  ;;  %p3950_p10 = scmp.lt.s32.totalorder %s3944_s30, %s3944_s30 }
 0x67d   :  { %p3951_p11 = por %p3950_p10, %p3949_p9 }
 0x67f   :  { %p3952_p12 = pnand %p3951_p11, %p3945_p8 }
 0x6ab   :  { %v2782_v58 = vpop.f32.mrb[20].mxu1 }
 0x6ac   :  { %v2783_v59 = vadd.f32 %v2782_v58, %v2038_v32  ;;  %v2784_v60 = vpop.f32.mrb[21].mxu1 }
 0x6ad   :  { %v2785_v61 = vadd.f32 %v2784_v60, %v2042_v57  ;;  %v2786_v62 = vpop.f32.mrb[22].mxu1 }
 0x6ae   :  { %2873 = vst [vmem:[#allocation26 + $0x10] sm:$0xff] %v2783_v59  ;;  %v2787_v63 = vpop.f32.mrb[23].mxu1 }
 0x6af   :  { %2874 = vst [vmem:[#allocation26 + $0x18] sm:$0xff] %v2785_v61 }
 0x6eb   :  { %v2864_v4 = vpop.f32.mrb[24].mxu1 }
 0x6ec   :  { %v2865_v6 = vadd.f32 %v2864_v4, %v2054_v2  ;;  %v2866_v7 = vpop.f32.mrb[25].mxu1 }
 0x6ed   :  { %v2867_v8 = vadd.f32 %v2866_v7, %v2058_v3  ;;  %v2868_v9 = vpop.f32.mrb[26].mxu1 }
 0x6ee   :  { %2877 = vst [vmem:[#allocation26 + $0x30] sm:$0xff] %v2865_v6  ;;  %v2869_v10 = vpop.f32.mrb[27].mxu1 }
 0x6ef   :  { %2878 = vst [vmem:[#allocation26 + $0x38] sm:$0xff] %v2867_v8 }
 0x6f0   :  { %3955 = shalt.err (!%p3952_p12)
}
 0x6f1   :  { %s3956_s4 = scalar_lea.hbm %s4423_s15, 1024 }
 0x6f2   :  { %p3957_p13 = scmp.ne.s32.totalorder %s4423_s15, %s3956_s4  ;;  %p3960_p0 = scmp.lt.u32.totalorder %s3956_s4, %s4423_s15 }
 0x6f4   :  { %p3962_p1 = pnand %p3960_p0, %p3957_p13 }
 0x6f6   :  { %3965 = shalt.err (!%p3962_p1)
}
 0x6f7   :  { %2898 = dma.vmem_to_hbm [thread:$0]  %s2896_s5, 1024, %s4423_s15, [#allocation27]  }
 0x6f8   :  { %s3966_s12 = scalar_lea.vmem %s2906_s29, 128  ;;  %p3971_p3 = scmp.lt.s32.totalorder %s2906_s29, %s2906_s29 }
 0x6f9   :  { %p3967_p2 = scmp.ne.s32.totalorder %s2906_s29, %s3966_s12  ;;  %p3972_p4 = scmp.lt.s32.totalorder %s3966_s12, %s3966_s12 }
 0x6fb   :  { %p3973_p5 = por %p3972_p4, %p3971_p3 }
 0x6fd   :  { %p3974_p6 = pnand %p3973_p5, %p3967_p2 }
 0x6ff   :  { %3977 = shalt.err (!%p3974_p6)
}
 0x700   :  { %s3978_s13 = scalar_lea.hbm %s4424_s16, 128 }
 0x701   :  { %p3979_p7 = scmp.ne.s32.totalorder %s4424_s16, %s3978_s13  ;;  %p3982_p8 = scmp.lt.u32.totalorder %s3978_s13, %s4424_s16 }
 0x703   :  { %p3984_p9 = pnand %p3982_p8, %p3979_p7 }
 0x705   :  { %3987 = shalt.err (!%p3984_p9)
}
 0x706   :  { %2908 = dma.vmem_to_hbm [thread:$0]  %s2906_s29, 128, %s4424_s16, [#allocation27]  }
 0x707   :  { %4004 = dma.done.wait [#allocation4], 128  }
 0x708   :  { %4005 = vsyncadd [#allocation4], 4294967168 }
 0x709   :  { %4006 = dma.done.wait [#allocation27], 1152  }
 0x70a   :  { %4007 = vsyncadd [#allocation27], 4294966144 }
 0x70b   :  { %2918 = vsyncpa [#allocation3], 1 }
 0x70c   :  { %2919 = vsyncpa [#allocation6], 1 }
 0x70d   :  { %2920 = vsyncpa [#allocation9], 1 }
 0x70e   :  { %2921 = vsyncpa [#allocation12], 1 }
 0x70f   :  { %2922 = vsyncpa [#allocation15], 1 }
 0x710   :  { %2923 = vsyncpa [#allocation18], 1 }
 0x711   :  { %2924 = vsyncpa [#allocation21], 1 }
 0x712   :  { %2925 = vsyncpa [#allocation24], 1 }
 0x713   :  { %2926 = vsyncpa [#allocation4], 1 }
 0x714   :  { %2927 = vsyncpa [#allocation27], 1 }

</bundles_post_ra>
